<compile_context>
chip_gen: v5e
topology: v5e:2x2
jax: 0.10.0
libtpu: 0.0.40
codegen_flags: <defaults>
</compile_context>

<pallas_src>
import functools

import jax
import jax.numpy as jnp
from jax.experimental import pallas as pl
from jax.experimental.pallas import tpu as pltpu

VOCAB_SIZE = 1499


def lstm_fc_kernel(x_ref, wih_ref, whh_ref, b_ref, wfc_ref, bfc_ref,
                   out_ref, h_all_sc, *, batch, seq_len):
    """Whole-sequence LSTM + FC in a single kernel invocation.

    x_ref    : (T*B, E)  time-major embedded inputs, flattened over (T, B)
    wih_ref  : (E, 4E)   W_ih^T
    whh_ref  : (E, 4E)   W_hh^T
    b_ref    : (1, 4E)   b_ih + b_hh
    wfc_ref  : (E, O)    W_fc^T
    bfc_ref  : (1, O)    b_fc
    out_ref  : (T*B, O)  logits, flattened over (T, B)
    h_all_sc : (T*B, E)  VMEM scratch collecting h_t for the batched FC matmul
    """
    hidden = h_all_sc.shape[1]

    # Non-recurrent input projection for ALL timesteps at once (one well-shaped
    # MXU matmul), with the bias broadcast folded in exactly once (not per step).
    gx = (jnp.dot(x_ref[...], wih_ref[...], preferred_element_type=jnp.float32)
          + b_ref[...])                                        # (T*B, 4E)

    whh = whh_ref[...]                                         # hoist weight load

    # ---- Peeled step t = 0: h0 = c0 = 0, so no recurrent matmul and no forget
    # gate are needed.  Gate-column slices are at 128-lane multiples (free vreg
    # selection).
    g0 = gx[0:batch, :]                                        # (B, 4E)
    i0 = jax.nn.sigmoid(g0[:, 0 * hidden:1 * hidden])
    g0g = jnp.tanh(g0[:, 2 * hidden:3 * hidden])
    o0 = jax.nn.sigmoid(g0[:, 3 * hidden:4 * hidden])
    c = i0 * g0g                                               # f0 * c0 == 0
    h = o0 * jnp.tanh(c)
    h_all_sc[0:batch, :] = h

    # ---- Steps 1..T-1: seq_len is a trace-time constant -> fully unrolled; only
    # the small h @ W_hh^T matmul and the gate nonlinearities (EUP) sit on the
    # serial chain.  The gx slices have no dependence on h, so the scheduler
    # hoists them off the chain.
    for t in range(1, seq_len):
        row = t * batch
        g = gx[row:row + batch, :] + jnp.dot(
            h, whh, preferred_element_type=jnp.float32)        # (B, 4E)

        i_g = jax.nn.sigmoid(g[:, 0 * hidden:1 * hidden])
        f_g = jax.nn.sigmoid(g[:, 1 * hidden:2 * hidden])
        g_g = jnp.tanh(g[:, 2 * hidden:3 * hidden])
        o_g = jax.nn.sigmoid(g[:, 3 * hidden:4 * hidden])

        c = f_g * c + i_g * g_g
        h = o_g * jnp.tanh(c)

        # Off the critical path: stash h_t for the batched FC at the end.
        h_all_sc[row:row + batch, :] = h

    # One batched FC over all timesteps -> single lane-dense (T*B, O) store
    # (O = 256 is a multiple of 128, so the writeback is unmasked).
    out_ref[...] = (jnp.dot(h_all_sc[...], wfc_ref[...],
                            preferred_element_type=jnp.float32)
                    + bfc_ref[...]).astype(out_ref.dtype)


@jax.jit
def lstm_forward(tokens, emb_table, w_ih, w_hh, b_ih, b_hh, w_fc, b_fc):
    """PyTorch-equivalent forward: Embedding -> LSTM (batch_first) -> Linear."""
    B, T = tokens.shape
    E = emb_table.shape[1]
    O = w_fc.shape[0]

    # Embedding gather (glue, plain JAX) done directly in time-major order so no
    # separate (B,T,E)->(T,B,E) transpose of the activations is materialized.
    x_flat = emb_table[tokens.T].reshape(T * B, E)             # (T*B, E)

    wih_t = w_ih.T                                             # (E, 4E)
    whh_t = w_hh.T                                             # (E, 4E)
    b = (b_ih + b_hh)[None, :]                                 # (1, 4E)
    wfc_t = w_fc.T                                             # (E, O)
    bfc = b_fc[None, :]                                        # (1, O)

    kernel = functools.partial(lstm_fc_kernel, batch=B, seq_len=T)

    # Single invocation: everything lives in VMEM for the whole sequence; no grid
    # means no per-timestep pipeline/DMA bookkeeping.
    # TODO(synk): with B=2 only 2/8 sublanes (and 2 MXU rows) are active on the
    # serial h @ W_hh^T chain; batching more sequences per call is the only way
    # past that structural ceiling.
    out_flat = pl.pallas_call(
        kernel,
        out_shape=jax.ShapeDtypeStruct((T * B, O), jnp.float32),
        scratch_shapes=[pltpu.VMEM((T * B, E), jnp.float32)],  # h_t collector
    )(x_flat, wih_t, whh_t, b, wfc_t, bfc)

    out_tm = out_flat.reshape(T, B, O)
    return jnp.transpose(out_tm, (1, 0, 2))                    # (B, T, O) batch_first


def lstm_forward_ref(tokens, emb_table, w_ih, w_hh, b_ih, b_hh, w_fc, b_fc):
    """Pure-JAX reference (lax.scan) matching torch.nn.LSTM semantics."""
    x_emb = emb_table[tokens]                 # (B, T, E)
    x_tm = jnp.transpose(x_emb, (1, 0, 2))    # (T, B, E)
    B = x_tm.shape[1]
    bias = b_ih + b_hh

    def step(carry, x_t):
        h, c = carry
        gates = x_t @ w_ih.T + h @ w_hh.T + bias
        i_g, f_g, g_g, o_g = jnp.split(gates, 4, axis=-1)
        i_g = jax.nn.sigmoid(i_g)
        f_g = jax.nn.sigmoid(f_g)
        g_g = jnp.tanh(g_g)
        o_g = jax.nn.sigmoid(o_g)
        c_new = f_g * c + i_g * g_g
        h_new = o_g * jnp.tanh(c_new)
        return (h_new, c_new), h_new

    E = emb_table.shape[1]
    init = (jnp.zeros((B, E), jnp.float32), jnp.zeros((B, E), jnp.float32))
    _, hs = jax.lax.scan(step, init, x_tm)    # (T, B, E)
    out = hs @ w_fc.T + b_fc                  # (T, B, O)
    return jnp.transpose(out, (1, 0, 2))


if __name__ == "__main__":
    # Small shapes consistent with the module's forward.
    B, T = 2, 8
    embedding_size = 128
    output_size = 256
    vocab_size = VOCAB_SIZE

    key = jax.random.PRNGKey(0)
    k_tok, k_emb, k_wih, k_whh, k_bih, k_bhh, k_wfc, k_bfc = jax.random.split(key, 8)

    tokens = jax.random.randint(k_tok, (B, T), 0, vocab_size, dtype=jnp.int32)

    scale = 0.05
    emb_table = (scale * jax.random.normal(k_emb, (vocab_size, embedding_size))).astype(jnp.float32)
    w_ih = (scale * jax.random.normal(k_wih, (4 * embedding_size, embedding_size))).astype(jnp.float32)
    w_hh = (scale * jax.random.normal(k_whh, (4 * embedding_size, embedding_size))).astype(jnp.float32)
    b_ih = (scale * jax.random.normal(k_bih, (4 * embedding_size,))).astype(jnp.float32)
    b_hh = (scale * jax.random.normal(k_bhh, (4 * embedding_size,))).astype(jnp.float32)
    w_fc = (scale * jax.random.normal(k_wfc, (output_size, embedding_size))).astype(jnp.float32)
    b_fc = (scale * jax.random.normal(k_bfc, (output_size,))).astype(jnp.float32)

    out = lstm_forward(tokens, emb_table, w_ih, w_hh, b_ih, b_hh, w_fc, b_fc)
    out = jax.block_until_ready(out)

    ref = lstm_forward_ref(tokens, emb_table, w_ih, w_hh, b_ih, b_hh, w_fc, b_fc)
    ref = jax.block_until_ready(ref)

    assert out.shape == (B, T, output_size), out.shape
    assert jnp.allclose(out, ref, atol=1e-5, rtol=1e-5), float(jnp.max(jnp.abs(out - ref)))

    print("KERNEL_OK")
</pallas_src>

<mosaic_0001>
module attributes {stable_mosaic.version = 11 : i64} {
  func.func @lstm_fc_kernel(%arg0: memref<16x128xf32, #tpu.memory_space<vmem>>, %arg1: memref<128x512xf32, #tpu.memory_space<vmem>>, %arg2: memref<128x512xf32, #tpu.memory_space<vmem>>, %arg3: memref<1x512xf32, #tpu.memory_space<vmem>>, %arg4: memref<128x256xf32, #tpu.memory_space<vmem>>, %arg5: memref<1x256xf32, #tpu.memory_space<vmem>>, %arg6: memref<16x256xf32, #tpu.memory_space<vmem>>, %arg7: memref<16x128xf32, #tpu.memory_space<vmem>>) attributes {dimension_semantics = [], scalar_prefetch = 0 : i64, scratch_operands = 1 : i64, tpu.core_type = #tpu.core_type<tc>} {
    %c0 = arith.constant 0 : index
    %c0_0 = arith.constant 0 : index
    %0 = vector.load %arg0[%c0, %c0_0] : memref<16x128xf32, #tpu.memory_space<vmem>>, vector<16x128xf32>
    %c0_1 = arith.constant 0 : index
    %c0_2 = arith.constant 0 : index
    %1 = vector.load %arg1[%c0_1, %c0_2] : memref<128x512xf32, #tpu.memory_space<vmem>>, vector<128x512xf32>
    %cst = arith.constant dense<0.000000e+00> : vector<16x512xf32>
    %2 = tpu.matmul %0, %1, %cst {dimension_numbers = #tpu.dot_dimension_numbers<[1], [0], [0], [1], [0, 0, 1, 1], [], []>} : vector<16x128xf32>, vector<128x512xf32>, vector<16x512xf32> -> vector<16x512xf32>
    %c0_3 = arith.constant 0 : index
    %c0_4 = arith.constant 0 : index
    %3 = vector.load %arg3[%c0_3, %c0_4] : memref<1x512xf32, #tpu.memory_space<vmem>>, vector<1x512xf32>
    %4 = vector.broadcast %3 : vector<1x512xf32> to vector<16x512xf32>
    %5 = arith.addf %2, %4 : vector<16x512xf32>
    %c0_5 = arith.constant 0 : index
    %c0_6 = arith.constant 0 : index
    %6 = vector.load %arg2[%c0_5, %c0_6] : memref<128x512xf32, #tpu.memory_space<vmem>>, vector<128x512xf32>
    %7 = vector.extract_strided_slice %5 {offsets = [0, 0], sizes = [2, 512], strides = [1, 1]} : vector<16x512xf32> to vector<2x512xf32>
    %8 = vector.extract_strided_slice %7 {offsets = [0, 0], sizes = [2, 128], strides = [1, 1]} : vector<2x512xf32> to vector<2x128xf32>
    %9 = arith.negf %8 : vector<2x128xf32>
    %10 = math.exp %9 : vector<2x128xf32>
    %cst_7 = arith.constant 1.000000e+00 : f32
    %11 = vector.broadcast %cst_7 : f32 to vector<2x128xf32>
    %12 = arith.addf %11, %10 : vector<2x128xf32>
    %13 = arith.divf %11, %12 : vector<2x128xf32>
    %14 = vector.extract_strided_slice %7 {offsets = [0, 256], sizes = [2, 128], strides = [1, 1]} : vector<2x512xf32> to vector<2x128xf32>
    %15 = math.tanh %14 : vector<2x128xf32>
    %16 = vector.extract_strided_slice %7 {offsets = [0, 384], sizes = [2, 128], strides = [1, 1]} : vector<2x512xf32> to vector<2x128xf32>
    %17 = arith.negf %16 : vector<2x128xf32>
    %18 = math.exp %17 : vector<2x128xf32>
    %cst_8 = arith.constant 1.000000e+00 : f32
    %19 = vector.broadcast %cst_8 : f32 to vector<2x128xf32>
    %20 = arith.addf %19, %18 : vector<2x128xf32>
    %21 = arith.divf %19, %20 : vector<2x128xf32>
    %22 = arith.mulf %13, %15 : vector<2x128xf32>
    %23 = math.tanh %22 : vector<2x128xf32>
    %24 = arith.mulf %21, %23 : vector<2x128xf32>
    %c0_9 = arith.constant 0 : index
    %c0_10 = arith.constant 0 : index
    %25 = vector.load %arg7[%c0_9, %c0_10] : memref<16x128xf32, #tpu.memory_space<vmem>>, vector<2x128xf32>
    tpu.vector_store %arg7[%c0_9, %c0_10], %24 {strides = array<i32>} : memref<16x128xf32, #tpu.memory_space<vmem>>, vector<2x128xf32>,
    %26 = vector.extract_strided_slice %5 {offsets = [2, 0], sizes = [2, 512], strides = [1, 1]} : vector<16x512xf32> to vector<2x512xf32>
    %cst_11 = arith.constant dense<0.000000e+00> : vector<2x512xf32>
    %27 = tpu.matmul %24, %6, %cst_11 {dimension_numbers = #tpu.dot_dimension_numbers<[1], [0], [0], [1], [0, 0, 1, 1], [], []>} : vector<2x128xf32>, vector<128x512xf32>, vector<2x512xf32> -> vector<2x512xf32>
    %28 = arith.addf %26, %27 : vector<2x512xf32>
    %29 = vector.extract_strided_slice %28 {offsets = [0, 0], sizes = [2, 128], strides = [1, 1]} : vector<2x512xf32> to vector<2x128xf32>
    %30 = arith.negf %29 : vector<2x128xf32>
    %31 = math.exp %30 : vector<2x128xf32>
    %cst_12 = arith.constant 1.000000e+00 : f32
    %32 = vector.broadcast %cst_12 : f32 to vector<2x128xf32>
    %33 = arith.addf %32, %31 : vector<2x128xf32>
    %34 = arith.divf %32, %33 : vector<2x128xf32>
    %35 = vector.extract_strided_slice %28 {offsets = [0, 128], sizes = [2, 128], strides = [1, 1]} : vector<2x512xf32> to vector<2x128xf32>
    %36 = arith.negf %35 : vector<2x128xf32>
    %37 = math.exp %36 : vector<2x128xf32>
    %cst_13 = arith.constant 1.000000e+00 : f32
    %38 = vector.broadcast %cst_13 : f32 to vector<2x128xf32>
    %39 = arith.addf %38, %37 : vector<2x128xf32>
    %40 = arith.divf %38, %39 : vector<2x128xf32>
    %41 = vector.extract_strided_slice %28 {offsets = [0, 256], sizes = [2, 128], strides = [1, 1]} : vector<2x512xf32> to vector<2x128xf32>
    %42 = math.tanh %41 : vector<2x128xf32>
    %43 = vector.extract_strided_slice %28 {offsets = [0, 384], sizes = [2, 128], strides = [1, 1]} : vector<2x512xf32> to vector<2x128xf32>
    %44 = arith.negf %43 : vector<2x128xf32>
    %45 = math.exp %44 : vector<2x128xf32>
    %cst_14 = arith.constant 1.000000e+00 : f32
    %46 = vector.broadcast %cst_14 : f32 to vector<2x128xf32>
    %47 = arith.addf %46, %45 : vector<2x128xf32>
    %48 = arith.divf %46, %47 : vector<2x128xf32>
    %49 = arith.mulf %40, %22 : vector<2x128xf32>
    %50 = arith.mulf %34, %42 : vector<2x128xf32>
    %51 = arith.addf %49, %50 : vector<2x128xf32>
    %52 = math.tanh %51 : vector<2x128xf32>
    %53 = arith.mulf %48, %52 : vector<2x128xf32>
    %c2 = arith.constant 2 : index
    %c0_15 = arith.constant 0 : index
    %54 = vector.load %arg7[%c2, %c0_15] : memref<16x128xf32, #tpu.memory_space<vmem>>, vector<2x128xf32>
    tpu.vector_store %arg7[%c2, %c0_15], %53 {strides = array<i32>} : memref<16x128xf32, #tpu.memory_space<vmem>>, vector<2x128xf32>,
    %55 = vector.extract_strided_slice %5 {offsets = [4, 0], sizes = [2, 512], strides = [1, 1]} : vector<16x512xf32> to vector<2x512xf32>
    %cst_16 = arith.constant dense<0.000000e+00> : vector<2x512xf32>
    %56 = tpu.matmul %53, %6, %cst_16 {dimension_numbers = #tpu.dot_dimension_numbers<[1], [0], [0], [1], [0, 0, 1, 1], [], []>} : vector<2x128xf32>, vector<128x512xf32>, vector<2x512xf32> -> vector<2x512xf32>
    %57 = arith.addf %55, %56 : vector<2x512xf32>
    %58 = vector.extract_strided_slice %57 {offsets = [0, 0], sizes = [2, 128], strides = [1, 1]} : vector<2x512xf32> to vector<2x128xf32>
    %59 = arith.negf %58 : vector<2x128xf32>
    %60 = math.exp %59 : vector<2x128xf32>
    %cst_17 = arith.constant 1.000000e+00 : f32
    %61 = vector.broadcast %cst_17 : f32 to vector<2x128xf32>
    %62 = arith.addf %61, %60 : vector<2x128xf32>
    %63 = arith.divf %61, %62 : vector<2x128xf32>
    %64 = vector.extract_strided_slice %57 {offsets = [0, 128], sizes = [2, 128], strides = [1, 1]} : vector<2x512xf32> to vector<2x128xf32>
    %65 = arith.negf %64 : vector<2x128xf32>
    %66 = math.exp %65 : vector<2x128xf32>
    %cst_18 = arith.constant 1.000000e+00 : f32
    %67 = vector.broadcast %cst_18 : f32 to vector<2x128xf32>
    %68 = arith.addf %67, %66 : vector<2x128xf32>
    %69 = arith.divf %67, %68 : vector<2x128xf32>
    %70 = vector.extract_strided_slice %57 {offsets = [0, 256], sizes = [2, 128], strides = [1, 1]} : vector<2x512xf32> to vector<2x128xf32>
    %71 = math.tanh %70 : vector<2x128xf32>
    %72 = vector.extract_strided_slice %57 {offsets = [0, 384], sizes = [2, 128], strides = [1, 1]} : vector<2x512xf32> to vector<2x128xf32>
    %73 = arith.negf %72 : vector<2x128xf32>
    %74 = math.exp %73 : vector<2x128xf32>
    %cst_19 = arith.constant 1.000000e+00 : f32
    %75 = vector.broadcast %cst_19 : f32 to vector<2x128xf32>
    %76 = arith.addf %75, %74 : vector<2x128xf32>
    %77 = arith.divf %75, %76 : vector<2x128xf32>
    %78 = arith.mulf %69, %51 : vector<2x128xf32>
    %79 = arith.mulf %63, %71 : vector<2x128xf32>
    %80 = arith.addf %78, %79 : vector<2x128xf32>
    %81 = math.tanh %80 : vector<2x128xf32>
    %82 = arith.mulf %77, %81 : vector<2x128xf32>
    %c4 = arith.constant 4 : index
    %c0_20 = arith.constant 0 : index
    %83 = vector.load %arg7[%c4, %c0_20] : memref<16x128xf32, #tpu.memory_space<vmem>>, vector<2x128xf32>
    tpu.vector_store %arg7[%c4, %c0_20], %82 {strides = array<i32>} : memref<16x128xf32, #tpu.memory_space<vmem>>, vector<2x128xf32>,
    %84 = vector.extract_strided_slice %5 {offsets = [6, 0], sizes = [2, 512], strides = [1, 1]} : vector<16x512xf32> to vector<2x512xf32>
    %cst_21 = arith.constant dense<0.000000e+00> : vector<2x512xf32>
    %85 = tpu.matmul %82, %6, %cst_21 {dimension_numbers = #tpu.dot_dimension_numbers<[1], [0], [0], [1], [0, 0, 1, 1], [], []>} : vector<2x128xf32>, vector<128x512xf32>, vector<2x512xf32> -> vector<2x512xf32>
    %86 = arith.addf %84, %85 : vector<2x512xf32>
    %87 = vector.extract_strided_slice %86 {offsets = [0, 0], sizes = [2, 128], strides = [1, 1]} : vector<2x512xf32> to vector<2x128xf32>
    %88 = arith.negf %87 : vector<2x128xf32>
    %89 = math.exp %88 : vector<2x128xf32>
    %cst_22 = arith.constant 1.000000e+00 : f32
    %90 = vector.broadcast %cst_22 : f32 to vector<2x128xf32>
    %91 = arith.addf %90, %89 : vector<2x128xf32>
    %92 = arith.divf %90, %91 : vector<2x128xf32>
    %93 = vector.extract_strided_slice %86 {offsets = [0, 128], sizes = [2, 128], strides = [1, 1]} : vector<2x512xf32> to vector<2x128xf32>
    %94 = arith.negf %93 : vector<2x128xf32>
    %95 = math.exp %94 : vector<2x128xf32>
    %cst_23 = arith.constant 1.000000e+00 : f32
    %96 = vector.broadcast %cst_23 : f32 to vector<2x128xf32>
    %97 = arith.addf %96, %95 : vector<2x128xf32>
    %98 = arith.divf %96, %97 : vector<2x128xf32>
    %99 = vector.extract_strided_slice %86 {offsets = [0, 256], sizes = [2, 128], strides = [1, 1]} : vector<2x512xf32> to vector<2x128xf32>
    %100 = math.tanh %99 : vector<2x128xf32>
    %101 = vector.extract_strided_slice %86 {offsets = [0, 384], sizes = [2, 128], strides = [1, 1]} : vector<2x512xf32> to vector<2x128xf32>
    %102 = arith.negf %101 : vector<2x128xf32>
    %103 = math.exp %102 : vector<2x128xf32>
    %cst_24 = arith.constant 1.000000e+00 : f32
    %104 = vector.broadcast %cst_24 : f32 to vector<2x128xf32>
    %105 = arith.addf %104, %103 : vector<2x128xf32>
    %106 = arith.divf %104, %105 : vector<2x128xf32>
    %107 = arith.mulf %98, %80 : vector<2x128xf32>
    %108 = arith.mulf %92, %100 : vector<2x128xf32>
    %109 = arith.addf %107, %108 : vector<2x128xf32>
    %110 = math.tanh %109 : vector<2x128xf32>
    %111 = arith.mulf %106, %110 : vector<2x128xf32>
    %c6 = arith.constant 6 : index
    %c0_25 = arith.constant 0 : index
    %112 = vector.load %arg7[%c6, %c0_25] : memref<16x128xf32, #tpu.memory_space<vmem>>, vector<2x128xf32>
    tpu.vector_store %arg7[%c6, %c0_25], %111 {strides = array<i32>} : memref<16x128xf32, #tpu.memory_space<vmem>>, vector<2x128xf32>,
    %113 = vector.extract_strided_slice %5 {offsets = [8, 0], sizes = [2, 512], strides = [1, 1]} : vector<16x512xf32> to vector<2x512xf32>
    %cst_26 = arith.constant dense<0.000000e+00> : vector<2x512xf32>
    %114 = tpu.matmul %111, %6, %cst_26 {dimension_numbers = #tpu.dot_dimension_numbers<[1], [0], [0], [1], [0, 0, 1, 1], [], []>} : vector<2x128xf32>, vector<128x512xf32>, vector<2x512xf32> -> vector<2x512xf32>
    %115 = arith.addf %113, %114 : vector<2x512xf32>
    %116 = vector.extract_strided_slice %115 {offsets = [0, 0], sizes = [2, 128], strides = [1, 1]} : vector<2x512xf32> to vector<2x128xf32>
    %117 = arith.negf %116 : vector<2x128xf32>
    %118 = math.exp %117 : vector<2x128xf32>
    %cst_27 = arith.constant 1.000000e+00 : f32
    %119 = vector.broadcast %cst_27 : f32 to vector<2x128xf32>
    %120 = arith.addf %119, %118 : vector<2x128xf32>
    %121 = arith.divf %119, %120 : vector<2x128xf32>
    %122 = vector.extract_strided_slice %115 {offsets = [0, 128], sizes = [2, 128], strides = [1, 1]} : vector<2x512xf32> to vector<2x128xf32>
    %123 = arith.negf %122 : vector<2x128xf32>
    %124 = math.exp %123 : vector<2x128xf32>
    %cst_28 = arith.constant 1.000000e+00 : f32
    %125 = vector.broadcast %cst_28 : f32 to vector<2x128xf32>
    %126 = arith.addf %125, %124 : vector<2x128xf32>
    %127 = arith.divf %125, %126 : vector<2x128xf32>
    %128 = vector.extract_strided_slice %115 {offsets = [0, 256], sizes = [2, 128], strides = [1, 1]} : vector<2x512xf32> to vector<2x128xf32>
    %129 = math.tanh %128 : vector<2x128xf32>
    %130 = vector.extract_strided_slice %115 {offsets = [0, 384], sizes = [2, 128], strides = [1, 1]} : vector<2x512xf32> to vector<2x128xf32>
    %131 = arith.negf %130 : vector<2x128xf32>
    %132 = math.exp %131 : vector<2x128xf32>
    %cst_29 = arith.constant 1.000000e+00 : f32
    %133 = vector.broadcast %cst_29 : f32 to vector<2x128xf32>
    %134 = arith.addf %133, %132 : vector<2x128xf32>
    %135 = arith.divf %133, %134 : vector<2x128xf32>
    %136 = arith.mulf %127, %109 : vector<2x128xf32>
    %137 = arith.mulf %121, %129 : vector<2x128xf32>
    %138 = arith.addf %136, %137 : vector<2x128xf32>
    %139 = math.tanh %138 : vector<2x128xf32>
    %140 = arith.mulf %135, %139 : vector<2x128xf32>
    %c8 = arith.constant 8 : index
    %c0_30 = arith.constant 0 : index
    %141 = vector.load %arg7[%c8, %c0_30] : memref<16x128xf32, #tpu.memory_space<vmem>>, vector<2x128xf32>
    tpu.vector_store %arg7[%c8, %c0_30], %140 {strides = array<i32>} : memref<16x128xf32, #tpu.memory_space<vmem>>, vector<2x128xf32>,
    %142 = vector.extract_strided_slice %5 {offsets = [10, 0], sizes = [2, 512], strides = [1, 1]} : vector<16x512xf32> to vector<2x512xf32>
    %cst_31 = arith.constant dense<0.000000e+00> : vector<2x512xf32>
    %143 = tpu.matmul %140, %6, %cst_31 {dimension_numbers = #tpu.dot_dimension_numbers<[1], [0], [0], [1], [0, 0, 1, 1], [], []>} : vector<2x128xf32>, vector<128x512xf32>, vector<2x512xf32> -> vector<2x512xf32>
    %144 = arith.addf %142, %143 : vector<2x512xf32>
    %145 = vector.extract_strided_slice %144 {offsets = [0, 0], sizes = [2, 128], strides = [1, 1]} : vector<2x512xf32> to vector<2x128xf32>
    %146 = arith.negf %145 : vector<2x128xf32>
    %147 = math.exp %146 : vector<2x128xf32>
    %cst_32 = arith.constant 1.000000e+00 : f32
    %148 = vector.broadcast %cst_32 : f32 to vector<2x128xf32>
    %149 = arith.addf %148, %147 : vector<2x128xf32>
    %150 = arith.divf %148, %149 : vector<2x128xf32>
    %151 = vector.extract_strided_slice %144 {offsets = [0, 128], sizes = [2, 128], strides = [1, 1]} : vector<2x512xf32> to vector<2x128xf32>
    %152 = arith.negf %151 : vector<2x128xf32>
    %153 = math.exp %152 : vector<2x128xf32>
    %cst_33 = arith.constant 1.000000e+00 : f32
    %154 = vector.broadcast %cst_33 : f32 to vector<2x128xf32>
    %155 = arith.addf %154, %153 : vector<2x128xf32>
    %156 = arith.divf %154, %155 : vector<2x128xf32>
    %157 = vector.extract_strided_slice %144 {offsets = [0, 256], sizes = [2, 128], strides = [1, 1]} : vector<2x512xf32> to vector<2x128xf32>
    %158 = math.tanh %157 : vector<2x128xf32>
    %159 = vector.extract_strided_slice %144 {offsets = [0, 384], sizes = [2, 128], strides = [1, 1]} : vector<2x512xf32> to vector<2x128xf32>
    %160 = arith.negf %159 : vector<2x128xf32>
    %161 = math.exp %160 : vector<2x128xf32>
    %cst_34 = arith.constant 1.000000e+00 : f32
    %162 = vector.broadcast %cst_34 : f32 to vector<2x128xf32>
    %163 = arith.addf %162, %161 : vector<2x128xf32>
    %164 = arith.divf %162, %163 : vector<2x128xf32>
    %165 = arith.mulf %156, %138 : vector<2x128xf32>
    %166 = arith.mulf %150, %158 : vector<2x128xf32>
    %167 = arith.addf %165, %166 : vector<2x128xf32>
    %168 = math.tanh %167 : vector<2x128xf32>
    %169 = arith.mulf %164, %168 : vector<2x128xf32>
    %c10 = arith.constant 10 : index
    %c0_35 = arith.constant 0 : index
    %170 = vector.load %arg7[%c10, %c0_35] : memref<16x128xf32, #tpu.memory_space<vmem>>, vector<2x128xf32>
    tpu.vector_store %arg7[%c10, %c0_35], %169 {strides = array<i32>} : memref<16x128xf32, #tpu.memory_space<vmem>>, vector<2x128xf32>,
    %171 = vector.extract_strided_slice %5 {offsets = [12, 0], sizes = [2, 512], strides = [1, 1]} : vector<16x512xf32> to vector<2x512xf32>
    %cst_36 = arith.constant dense<0.000000e+00> : vector<2x512xf32>
    %172 = tpu.matmul %169, %6, %cst_36 {dimension_numbers = #tpu.dot_dimension_numbers<[1], [0], [0], [1], [0, 0, 1, 1], [], []>} : vector<2x128xf32>, vector<128x512xf32>, vector<2x512xf32> -> vector<2x512xf32>
    %173 = arith.addf %171, %172 : vector<2x512xf32>
    %174 = vector.extract_strided_slice %173 {offsets = [0, 0], sizes = [2, 128], strides = [1, 1]} : vector<2x512xf32> to vector<2x128xf32>
    %175 = arith.negf %174 : vector<2x128xf32>
    %176 = math.exp %175 : vector<2x128xf32>
    %cst_37 = arith.constant 1.000000e+00 : f32
    %177 = vector.broadcast %cst_37 : f32 to vector<2x128xf32>
    %178 = arith.addf %177, %176 : vector<2x128xf32>
    %179 = arith.divf %177, %178 : vector<2x128xf32>
    %180 = vector.extract_strided_slice %173 {offsets = [0, 128], sizes = [2, 128], strides = [1, 1]} : vector<2x512xf32> to vector<2x128xf32>
    %181 = arith.negf %180 : vector<2x128xf32>
    %182 = math.exp %181 : vector<2x128xf32>
    %cst_38 = arith.constant 1.000000e+00 : f32
    %183 = vector.broadcast %cst_38 : f32 to vector<2x128xf32>
    %184 = arith.addf %183, %182 : vector<2x128xf32>
    %185 = arith.divf %183, %184 : vector<2x128xf32>
    %186 = vector.extract_strided_slice %173 {offsets = [0, 256], sizes = [2, 128], strides = [1, 1]} : vector<2x512xf32> to vector<2x128xf32>
    %187 = math.tanh %186 : vector<2x128xf32>
    %188 = vector.extract_strided_slice %173 {offsets = [0, 384], sizes = [2, 128], strides = [1, 1]} : vector<2x512xf32> to vector<2x128xf32>
    %189 = arith.negf %188 : vector<2x128xf32>
    %190 = math.exp %189 : vector<2x128xf32>
    %cst_39 = arith.constant 1.000000e+00 : f32
    %191 = vector.broadcast %cst_39 : f32 to vector<2x128xf32>
    %192 = arith.addf %191, %190 : vector<2x128xf32>
    %193 = arith.divf %191, %192 : vector<2x128xf32>
    %194 = arith.mulf %185, %167 : vector<2x128xf32>
    %195 = arith.mulf %179, %187 : vector<2x128xf32>
    %196 = arith.addf %194, %195 : vector<2x128xf32>
    %197 = math.tanh %196 : vector<2x128xf32>
    %198 = arith.mulf %193, %197 : vector<2x128xf32>
    %c12 = arith.constant 12 : index
    %c0_40 = arith.constant 0 : index
    %199 = vector.load %arg7[%c12, %c0_40] : memref<16x128xf32, #tpu.memory_space<vmem>>, vector<2x128xf32>
    tpu.vector_store %arg7[%c12, %c0_40], %198 {strides = array<i32>} : memref<16x128xf32, #tpu.memory_space<vmem>>, vector<2x128xf32>,
    %200 = vector.extract_strided_slice %5 {offsets = [14, 0], sizes = [2, 512], strides = [1, 1]} : vector<16x512xf32> to vector<2x512xf32>
    %cst_41 = arith.constant dense<0.000000e+00> : vector<2x512xf32>
    %201 = tpu.matmul %198, %6, %cst_41 {dimension_numbers = #tpu.dot_dimension_numbers<[1], [0], [0], [1], [0, 0, 1, 1], [], []>} : vector<2x128xf32>, vector<128x512xf32>, vector<2x512xf32> -> vector<2x512xf32>
    %202 = arith.addf %200, %201 : vector<2x512xf32>
    %203 = vector.extract_strided_slice %202 {offsets = [0, 0], sizes = [2, 128], strides = [1, 1]} : vector<2x512xf32> to vector<2x128xf32>
    %204 = arith.negf %203 : vector<2x128xf32>
    %205 = math.exp %204 : vector<2x128xf32>
    %cst_42 = arith.constant 1.000000e+00 : f32
    %206 = vector.broadcast %cst_42 : f32 to vector<2x128xf32>
    %207 = arith.addf %206, %205 : vector<2x128xf32>
    %208 = arith.divf %206, %207 : vector<2x128xf32>
    %209 = vector.extract_strided_slice %202 {offsets = [0, 128], sizes = [2, 128], strides = [1, 1]} : vector<2x512xf32> to vector<2x128xf32>
    %210 = arith.negf %209 : vector<2x128xf32>
    %211 = math.exp %210 : vector<2x128xf32>
    %cst_43 = arith.constant 1.000000e+00 : f32
    %212 = vector.broadcast %cst_43 : f32 to vector<2x128xf32>
    %213 = arith.addf %212, %211 : vector<2x128xf32>
    %214 = arith.divf %212, %213 : vector<2x128xf32>
    %215 = vector.extract_strided_slice %202 {offsets = [0, 256], sizes = [2, 128], strides = [1, 1]} : vector<2x512xf32> to vector<2x128xf32>
    %216 = math.tanh %215 : vector<2x128xf32>
    %217 = vector.extract_strided_slice %202 {offsets = [0, 384], sizes = [2, 128], strides = [1, 1]} : vector<2x512xf32> to vector<2x128xf32>
    %218 = arith.negf %217 : vector<2x128xf32>
    %219 = math.exp %218 : vector<2x128xf32>
    %cst_44 = arith.constant 1.000000e+00 : f32
    %220 = vector.broadcast %cst_44 : f32 to vector<2x128xf32>
    %221 = arith.addf %220, %219 : vector<2x128xf32>
    %222 = arith.divf %220, %221 : vector<2x128xf32>
    %223 = arith.mulf %214, %196 : vector<2x128xf32>
    %224 = arith.mulf %208, %216 : vector<2x128xf32>
    %225 = arith.addf %223, %224 : vector<2x128xf32>
    %226 = math.tanh %225 : vector<2x128xf32>
    %227 = arith.mulf %222, %226 : vector<2x128xf32>
    %c14 = arith.constant 14 : index
    %c0_45 = arith.constant 0 : index
    %228 = vector.load %arg7[%c14, %c0_45] : memref<16x128xf32, #tpu.memory_space<vmem>>, vector<2x128xf32>
    tpu.vector_store %arg7[%c14, %c0_45], %227 {strides = array<i32>} : memref<16x128xf32, #tpu.memory_space<vmem>>, vector<2x128xf32>,
    %c0_46 = arith.constant 0 : index
    %c0_47 = arith.constant 0 : index
    %229 = vector.load %arg7[%c0_46, %c0_47] : memref<16x128xf32, #tpu.memory_space<vmem>>, vector<16x128xf32>
    %c0_48 = arith.constant 0 : index
    %c0_49 = arith.constant 0 : index
    %230 = vector.load %arg4[%c0_48, %c0_49] : memref<128x256xf32, #tpu.memory_space<vmem>>, vector<128x256xf32>
    %cst_50 = arith.constant dense<0.000000e+00> : vector<16x256xf32>
    %231 = tpu.matmul %229, %230, %cst_50 {dimension_numbers = #tpu.dot_dimension_numbers<[1], [0], [0], [1], [0, 0, 1, 1], [], []>} : vector<16x128xf32>, vector<128x256xf32>, vector<16x256xf32> -> vector<16x256xf32>
    %c0_51 = arith.constant 0 : index
    %c0_52 = arith.constant 0 : index
    %232 = vector.load %arg5[%c0_51, %c0_52] : memref<1x256xf32, #tpu.memory_space<vmem>>, vector<1x256xf32>
    %233 = vector.broadcast %232 : vector<1x256xf32> to vector<16x256xf32>
    %234 = arith.addf %231, %233 : vector<16x256xf32>
    %c0_53 = arith.constant 0 : index
    %c0_54 = arith.constant 0 : index
    %235 = vector.load %arg6[%c0_53, %c0_54] : memref<16x256xf32, #tpu.memory_space<vmem>>, vector<16x256xf32>
    tpu.vector_store %arg6[%c0_53, %c0_54], %234 {strides = array<i32>} : memref<16x256xf32, #tpu.memory_space<vmem>>, vector<16x256xf32>,
    return
  }
}

</mosaic_0001>

<bundles_post_ra>
// kernel: lstm_forward.1
= control target key start
LH: loop header
LB: loop body
LE: loop exit
PB: predicated region body
PF: predicated region fallthrough
CT: control target
= control target key end

     0   :  { %s3322_s1 = inlined_call_operand.vmem [shape: f32[128,512], index: 1, kind: input, shape index: {}]   ;;  %s3323_s0 = inlined_call_operand.vmem [shape: f32[16,128], index: 0, kind: input, shape index: {}]   ;;  %s3324_s3 = inlined_call_operand.vmem [shape: f32[1,512], index: 3, kind: input, shape index: {}]   ;;  %s3325_s2 = inlined_call_operand.vmem [shape: f32[128,512], index: 2, kind: input, shape index: {}]   ;;  %s3326_s4 = inlined_call_operand.vmem [shape: f32[128,256], index: 4, kind: input, shape index: {}]   ;;  %s3327_s5 = inlined_call_operand.vmem [shape: f32[1,256], index: 5, kind: input, shape index: {}]   ;;  %s3328_s6 = inlined_call_operand.vmem [shape: f32[16,256], index: 6, kind: output, shape index: {}]  }
   0x1   :  { %v85_v0 = vld [vmem:[%s3322_s1 + $0x1e0] sm:$0xff]  ;;  %v86_v1 = vld [vmem:[%s3322_s1 + $0x1e8] sm:$0xff]  ;;  %v87_v32 = vld [vmem:[%s3322_s1 + $0x1f0] sm:$0xff] }
   0x2   :  { %v81_v2 = vld [vmem:[%s3322_s1 + $0x1c0] sm:$0xff]  ;;  %99 = vmatpush.msra.mxu2 %v85_v0  ;;  %122 = vmatpush.msra.mxu3 %v86_v1  ;;  %v82_v3 = vld [vmem:[%s3322_s1 + $0x1c8] sm:$0xff]  ;;  %v88_v33 = vld [vmem:[%s3322_s1 + $0x1f8] sm:$0xff] }
   0x3   :  { %v77_v4 = vld [vmem:[%s3322_s1 + $0x1a0] sm:$0xff]  ;;  %v78_v5 = vld [vmem:[%s3322_s1 + $0x1a8] sm:$0xff]  ;;  %v83_v35 = vld [vmem:[%s3322_s1 + $0x1d0] sm:$0xff] }
   0x4   :  { %100 = vmatpush.msra.mxu2 %v81_v2  ;;  %123 = vmatpush.msra.mxu3 %v82_v3  ;;  %v73_v6 = vld [vmem:[%s3322_s1 + $0x180] sm:$0xff]  ;;  %v74_v7 = vld [vmem:[%s3322_s1 + $0x188] sm:$0xff]  ;;  %v84_v36 = vld [vmem:[%s3322_s1 + $0x1d8] sm:$0xff] }
   0x5   :  { %v69_v8 = vld [vmem:[%s3322_s1 + $0x160] sm:$0xff]  ;;  %v70_v9 = vld [vmem:[%s3322_s1 + $0x168] sm:$0xff]  ;;  %v79_v37 = vld [vmem:[%s3322_s1 + $0x1b0] sm:$0xff] }
   0x6   :  { %101 = vmatpush.msra.mxu2 %v77_v4  ;;  %124 = vmatpush.msra.mxu3 %v78_v5  ;;  %v65_v10 = vld [vmem:[%s3322_s1 + $0x140] sm:$0xff]  ;;  %v66_v11 = vld [vmem:[%s3322_s1 + $0x148] sm:$0xff]  ;;  %v80_v38 = vld [vmem:[%s3322_s1 + $0x1b8] sm:$0xff] }
   0x7   :  { %v61_v12 = vld [vmem:[%s3322_s1 + $0x120] sm:$0xff]  ;;  %v62_v13 = vld [vmem:[%s3322_s1 + $0x128] sm:$0xff]  ;;  %v75_v39 = vld [vmem:[%s3322_s1 + $0x190] sm:$0xff] }
   0x8   :  { %102 = vmatpush.msra.mxu2 %v73_v6  ;;  %125 = vmatpush.msra.mxu3 %v74_v7  ;;  %v57_v14 = vld [vmem:[%s3322_s1 + $0x100] sm:$0xff]  ;;  %v58_v15 = vld [vmem:[%s3322_s1 + $0x108] sm:$0xff]  ;;  %v76_v40 = vld [vmem:[%s3322_s1 + $0x198] sm:$0xff] }
   0x9   :  { %v53_v16 = vld [vmem:[%s3322_s1 + $0xe0] sm:$0xff]  ;;  %v54_v17 = vld [vmem:[%s3322_s1 + $0xe8] sm:$0xff]  ;;  %v71_v41 = vld [vmem:[%s3322_s1 + $0x170] sm:$0xff] }
   0xa   :  { %103 = vmatpush.msra.mxu2 %v69_v8  ;;  %126 = vmatpush.msra.mxu3 %v70_v9  ;;  %v49_v18 = vld [vmem:[%s3322_s1 + $0xc0] sm:$0xff]  ;;  %v50_v19 = vld [vmem:[%s3322_s1 + $0xc8] sm:$0xff]  ;;  %v72_v42 = vld [vmem:[%s3322_s1 + $0x178] sm:$0xff] }
   0xb   :  { %v45_v20 = vld [vmem:[%s3322_s1 + $0xa0] sm:$0xff]  ;;  %v46_v21 = vld [vmem:[%s3322_s1 + $0xa8] sm:$0xff]  ;;  %v67_v44 = vld [vmem:[%s3322_s1 + $0x150] sm:$0xff] }
   0xc   :  { %104 = vmatpush.msra.mxu2 %v65_v10  ;;  %127 = vmatpush.msra.mxu3 %v66_v11  ;;  %v41_v22 = vld [vmem:[%s3322_s1 + $0x80] sm:$0xff]  ;;  %v42_v23 = vld [vmem:[%s3322_s1 + $0x88] sm:$0xff]  ;;  %v68_v45 = vld [vmem:[%s3322_s1 + $0x158] sm:$0xff] }
   0xd   :  { %v37_v24 = vld [vmem:[%s3322_s1 + $0x60] sm:$0xff]  ;;  %v38_v25 = vld [vmem:[%s3322_s1 + $0x68] sm:$0xff]  ;;  %v63_v46 = vld [vmem:[%s3322_s1 + $0x130] sm:$0xff] }
   0xe   :  { %105 = vmatpush.msra.mxu2 %v61_v12  ;;  %128 = vmatpush.msra.mxu3 %v62_v13  ;;  %v33_v26 = vld [vmem:[%s3322_s1 + $0x40] sm:$0xff]  ;;  %v34_v27 = vld [vmem:[%s3322_s1 + $0x48] sm:$0xff]  ;;  %v64_v47 = vld [vmem:[%s3322_s1 + $0x138] sm:$0xff] }
   0xf   :  { %v29_v28 = vld [vmem:[%s3322_s1 + $0x20] sm:$0xff]  ;;  %v30_v29 = vld [vmem:[%s3322_s1 + $0x28] sm:$0xff]  ;;  %v59_v48 = vld [vmem:[%s3322_s1 + $0x110] sm:$0xff] }
  0x10   :  { %106 = vmatpush.msra.mxu2 %v57_v14  ;;  %129 = vmatpush.msra.mxu3 %v58_v15  ;;  %v25_v30 = vld [vmem:[%s3322_s1] sm:$0xff]  ;;  %v26_v31 = vld [vmem:[%s3322_s1 + $0x8] sm:$0xff]  ;;  %v60_v49 = vld [vmem:[%s3322_s1 + $0x118] sm:$0xff] }
  0x11   :  { %v1887_v34 = vld [vmem:[%s3323_s0] sm:$0xff]  ;;  %v24_v43 = vld [vmem:[%s3323_s0 + $0x8] sm:$0xff]  ;;  %v55_v50 = vld [vmem:[%s3322_s1 + $0xf0] sm:$0xff] }
  0x12   :  { %107 = vmatpush.msra.mxu2 %v53_v16  ;;  %130 = vmatpush.msra.mxu3 %v54_v17  ;;  %v56_v51 = vld [vmem:[%s3322_s1 + $0xf8] sm:$0xff]  ;;  %v51_v52 = vld [vmem:[%s3322_s1 + $0xd0] sm:$0xff]  ;;  %v1989_v2 = vld [vmem:[%s3324_s3] sm:$0xf] }
  0x13   :  { %v52_v53 = vld [vmem:[%s3322_s1 + $0xd8] sm:$0xff]  ;;  %v47_v54 = vld [vmem:[%s3322_s1 + $0xb0] sm:$0xff]  ;;  %3444 = vst [vmem:[#allocation3_spill] sm:$0xff] %v1989_v2  ;;  %v91_v3 = vperm.slane %v1989_v2, 0  ;;  %v1995_v4 = vld [vmem:[%s3325_s2 + $0x1e0] sm:$0xff] }
  0x14   :  { %108 = vmatpush.msra.mxu2 %v49_v18  ;;  %131 = vmatpush.msra.mxu3 %v50_v19  ;;  %v48_v55 = vld [vmem:[%s3322_s1 + $0xb8] sm:$0xff]  ;;  %v43_v56 = vld [vmem:[%s3322_s1 + $0x90] sm:$0xff]  ;;  %v2000_v5 = vld [vmem:[%s3325_s2 + $0x1e8] sm:$0xff] }
  0x15   :  { %v44_v57 = vld [vmem:[%s3322_s1 + $0x98] sm:$0xff]  ;;  %v39_v58 = vld [vmem:[%s3322_s1 + $0x70] sm:$0xff]  ;;  %298 = vmatpush.msra.mxu0 %v1995_v4  ;;  %318 = vmatpush.msra.mxu1 %v2000_v5  ;;  %v2023_v11 = vld [vmem:[%s3325_s2 + $0x1c0] sm:$0xff] }
  0x16   :  { %109 = vmatpush.msra.mxu2 %v45_v20  ;;  %132 = vmatpush.msra.mxu3 %v46_v21  ;;  %v40_v59 = vld [vmem:[%s3322_s1 + $0x78] sm:$0xff]  ;;  %v35_v60 = vld [vmem:[%s3322_s1 + $0x50] sm:$0xff]  ;;  %v2028_v12 = vld [vmem:[%s3325_s2 + $0x1c8] sm:$0xff] }
  0x17   :  { %v36_v61 = vld [vmem:[%s3322_s1 + $0x58] sm:$0xff]  ;;  %v31_v62 = vld [vmem:[%s3322_s1 + $0x30] sm:$0xff]  ;;  %299 = vmatpush.msra.mxu0 %v2023_v11  ;;  %319 = vmatpush.msra.mxu1 %v2028_v12  ;;  %v2048_v16 = vld [vmem:[%s3325_s2 + $0x1a0] sm:$0xff] }
  0x18   :  { %110 = vmatpush.msra.mxu2 %v41_v22  ;;  %133 = vmatpush.msra.mxu3 %v42_v23  ;;  %v32_v63 = vld [vmem:[%s3322_s1 + $0x38] sm:$0xff]  ;;  %v27_v0 = vld [vmem:[%s3322_s1 + $0x10] sm:$0xff]  ;;  %v2053_v17 = vld [vmem:[%s3325_s2 + $0x1a8] sm:$0xff] }
  0x19   :  { %v28_v1 = vld [vmem:[%s3322_s1 + $0x18] sm:$0xff]  ;;  %v2005_v6 = vld [vmem:[%s3325_s2 + $0x1f0] sm:$0xff]  ;;  %300 = vmatpush.msra.mxu0 %v2048_v16  ;;  %320 = vmatpush.msra.mxu1 %v2053_v17  ;;  %v2072_v20 = vld [vmem:[%s3325_s2 + $0x180] sm:$0xff] }
  0x1a   :  { %111 = vmatpush.msra.mxu2 %v37_v24  ;;  %134 = vmatpush.msra.mxu3 %v38_v25  ;;  %v2014_v9 = vld [vmem:[%s3325_s2 + $0x1f8] sm:$0xff]  ;;  %v2033_v13 = vld [vmem:[%s3325_s2 + $0x1d0] sm:$0xff]  ;;  %v2077_v21 = vld [vmem:[%s3325_s2 + $0x188] sm:$0xff]  ;;  %v3329_v24 = vperm.slane %v1989_v2, 1 }
  0x1b   :  { %v2040_v14 = vld [vmem:[%s3325_s2 + $0x1d8] sm:$0xff]  ;;  %v2058_v18 = vld [vmem:[%s3325_s2 + $0x1b0] sm:$0xff]  ;;  %301 = vmatpush.msra.mxu0 %v2072_v20  ;;  %321 = vmatpush.msra.mxu1 %v2077_v21  ;;  %v2097_v25 = vld [vmem:[%s3325_s2 + $0x160] sm:$0xff] }
  0x1c   :  { %112 = vmatpush.msra.mxu2 %v33_v26  ;;  %135 = vmatpush.msra.mxu3 %v34_v27  ;;  %v2065_v19 = vld [vmem:[%s3325_s2 + $0x1b8] sm:$0xff]  ;;  %v2082_v22 = vld [vmem:[%s3325_s2 + $0x190] sm:$0xff]  ;;  %v2102_v26 = vld [vmem:[%s3325_s2 + $0x168] sm:$0xff] }
  0x1d   :  { %v2089_v23 = vld [vmem:[%s3325_s2 + $0x198] sm:$0xff]  ;;  %v2107_v27 = vld [vmem:[%s3325_s2 + $0x170] sm:$0xff]  ;;  %302 = vmatpush.msra.mxu0 %v2097_v25  ;;  %322 = vmatpush.msra.mxu1 %v2102_v26 }
  0x1e   :  { %113 = vmatpush.msra.mxu2 %v29_v28  ;;  %136 = vmatpush.msra.mxu3 %v30_v29 }
  0x20   :  { %114 = vmatpush.msra.mxu2 %v25_v30  ;;  %137 = vmatpush.msra.mxu3 %v26_v31  ;;  %v2114_v30 = vld [vmem:[%s3325_s2 + $0x178] sm:$0xff] }
  0x21   :  { %115 = vmatmul.f32.vlgmr.msra.gmra.mxu2 %v1887_v34  ;;  %138 = vmatmul.f32.vlgmr.msra.gmra.mxu3 %v1887_v34 }
  0x22   :  { %145 = vmatpush.msrb.mxu2 %v87_v32  ;;  %168 = vmatpush.msrb.mxu3 %v88_v33  ;;  %v2127_v33 = vld [vmem:[%s3325_s2 + $0x140] sm:$0xff] }
  0x23   :  { %303 = vmatpush.msra.mxu0 %v2127_v33 }
  0x24   :  { %146 = vmatpush.msrb.mxu2 %v83_v35  ;;  %169 = vmatpush.msrb.mxu3 %v84_v36  ;;  %v2137_v35 = vld [vmem:[%s3325_s2 + $0x150] sm:$0xff]  ;;  %v2144_v36 = vld [vmem:[%s3325_s2 + $0x158] sm:$0xff] }
  0x26   :  { %147 = vmatpush.msrb.mxu2 %v79_v37  ;;  %170 = vmatpush.msrb.mxu3 %v80_v38  ;;  %v2151_v37 = vld [vmem:[%s3325_s2 + $0x120] sm:$0xff]  ;;  %v2156_v38 = vld [vmem:[%s3325_s2 + $0x128] sm:$0xff] }
  0x27   :  { %304 = vmatpush.msra.mxu0 %v2151_v37 }
  0x28   :  { %148 = vmatpush.msrb.mxu2 %v75_v39  ;;  %171 = vmatpush.msrb.mxu3 %v76_v40  ;;  %v2161_v39 = vld [vmem:[%s3325_s2 + $0x130] sm:$0xff] }
  0x29   :  { %118 = vmatmul.f32.gmra.mxu2 %v24_v43  ;;  %141 = vmatmul.f32.gmra.mxu3 %v24_v43 }
  0x2a   :  { %149 = vmatpush.msrb.mxu2 %v71_v41  ;;  %172 = vmatpush.msrb.mxu3 %v72_v42  ;;  %v2168_v41 = vld [vmem:[%s3325_s2 + $0x138] sm:$0xff]  ;;  %v2175_v42 = vld [vmem:[%s3325_s2 + $0x100] sm:$0xff] }
  0x2b   :  { %305 = vmatpush.msra.mxu0 %v2175_v42 }
  0x2c   :  { %150 = vmatpush.msrb.mxu2 %v67_v44  ;;  %173 = vmatpush.msrb.mxu3 %v68_v45  ;;  %v2185_v44 = vld [vmem:[%s3325_s2 + $0x110] sm:$0xff]  ;;  %v2192_v45 = vld [vmem:[%s3325_s2 + $0x118] sm:$0xff] }
  0x2e   :  { %151 = vmatpush.msrb.mxu2 %v63_v46  ;;  %174 = vmatpush.msrb.mxu3 %v64_v47  ;;  %v2201_v47 = vld [vmem:[%s3325_s2 + $0xe0] sm:$0xff] }
  0x2f   :  { %306 = vmatpush.msra.mxu0 %v2201_v47 }
  0x30   :  { %152 = vmatpush.msrb.mxu2 %v59_v48  ;;  %175 = vmatpush.msrb.mxu3 %v60_v49  ;;  %v2206_v48 = vld [vmem:[%s3325_s2 + $0xe8] sm:$0xff]  ;;  %v2211_v49 = vld [vmem:[%s3325_s2 + $0xf0] sm:$0xff] }
  0x32   :  { %153 = vmatpush.msrb.mxu2 %v55_v50  ;;  %176 = vmatpush.msrb.mxu3 %v56_v51  ;;  %v2218_v50 = vld [vmem:[%s3325_s2 + $0xf8] sm:$0xff]  ;;  %v2225_v51 = vld [vmem:[%s3325_s2 + $0xc0] sm:$0xff] }
  0x33   :  { %307 = vmatpush.msra.mxu0 %v2225_v51 }
  0x34   :  { %154 = vmatpush.msrb.mxu2 %v51_v52  ;;  %177 = vmatpush.msrb.mxu3 %v52_v53  ;;  %v2230_v52 = vld [vmem:[%s3325_s2 + $0xc8] sm:$0xff]  ;;  %v2235_v53 = vld [vmem:[%s3325_s2 + $0xd0] sm:$0xff] }
  0x35   :  { %3449 = vst [vmem:[#allocation8_spill] sm:$0xff] %v2235_v53 }
  0x36   :  { %155 = vmatpush.msrb.mxu2 %v47_v54  ;;  %178 = vmatpush.msrb.mxu3 %v48_v55  ;;  %v2242_v54 = vld [vmem:[%s3325_s2 + $0xd8] sm:$0xff]  ;;  %v2250_v55 = vld [vmem:[%s3325_s2 + $0xa0] sm:$0xff] }
  0x37   :  { %3450 = vst [vmem:[#allocation9_spill] sm:$0xff] %v2242_v54  ;;  %308 = vmatpush.msra.mxu0 %v2250_v55 }
  0x38   :  { %156 = vmatpush.msrb.mxu2 %v43_v56  ;;  %179 = vmatpush.msrb.mxu3 %v44_v57  ;;  %3451 = vst [vmem:[#allocation10_spill] sm:$0xff] %v2250_v55  ;;  %v2255_v56 = vld [vmem:[%s3325_s2 + $0xa8] sm:$0xff]  ;;  %v2260_v57 = vld [vmem:[%s3325_s2 + $0xb0] sm:$0xff] }
  0x39   :  { %3452 = vst [vmem:[#allocation11_spill] sm:$0xff] %v2255_v56 }
  0x3a   :  { %157 = vmatpush.msrb.mxu2 %v39_v58  ;;  %180 = vmatpush.msrb.mxu3 %v40_v59  ;;  %3453 = vst [vmem:[#allocation12_spill] sm:$0xff] %v2260_v57  ;;  %v2267_v58 = vld [vmem:[%s3325_s2 + $0xb8] sm:$0xff]  ;;  %v2272_v59 = vld [vmem:[%s3325_s2 + $0x80] sm:$0xff] }
  0x3b   :  { %3454 = vst [vmem:[#allocation13_spill] sm:$0xff] %v2267_v58  ;;  %309 = vmatpush.msra.mxu0 %v2272_v59 }
  0x3c   :  { %158 = vmatpush.msrb.mxu2 %v35_v60  ;;  %181 = vmatpush.msrb.mxu3 %v36_v61  ;;  %3455 = vst [vmem:[#allocation14_spill] sm:$0xff] %v2272_v59  ;;  %v2277_v60 = vld [vmem:[%s3325_s2 + $0x88] sm:$0xff]  ;;  %v2284_v61 = vld [vmem:[%s3325_s2 + $0x90] sm:$0xff] }
  0x3d   :  { %3456 = vst [vmem:[#allocation15_spill] sm:$0xff] %v2277_v60 }
  0x3e   :  { %159 = vmatpush.msrb.mxu2 %v31_v62  ;;  %182 = vmatpush.msrb.mxu3 %v32_v63  ;;  %3457 = vst [vmem:[#allocation16_spill] sm:$0xff] %v2284_v61  ;;  %v2289_v62 = vld [vmem:[%s3325_s2 + $0x98] sm:$0xff]  ;;  %v2294_v63 = vld [vmem:[%s3325_s2 + $0x60] sm:$0xff] }
  0x3f   :  { %3458 = vst [vmem:[#allocation17_spill] sm:$0xff] %v2289_v62  ;;  %310 = vmatpush.msra.mxu0 %v2294_v63 }
  0x40   :  { %160 = vmatpush.msrb.mxu2 %v27_v0  ;;  %183 = vmatpush.msrb.mxu3 %v28_v1  ;;  %3459 = vst [vmem:[#allocation18_spill] sm:$0xff] %v2294_v63  ;;  %v2301_v0 = vld [vmem:[%s3325_s2 + $0x68] sm:$0xff]  ;;  %v2306_v1 = vld [vmem:[%s3325_s2 + $0x70] sm:$0xff] }
  0x41   :  { %161 = vmatmul.f32.vlgmr.msrb.gmra.mxu2 %v1887_v34  ;;  %184 = vmatmul.f32.vlgmr.msrb.gmra.mxu3 %v1887_v34  ;;  %v2132_v34 = vld [vmem:[%s3325_s2 + $0x148] sm:$0xff]  ;;  %3460 = vst [vmem:[#allocation19_spill] sm:$0xff] %v2301_v0 }
  0x42   :  { %338 = vmatpush.msra.mxu2 %v2005_v6  ;;  %358 = vmatpush.msra.mxu3 %v2014_v9  ;;  %3461 = vst [vmem:[#allocation20_spill] sm:$0xff] %v2306_v1 }
  0x43   :  { %323 = vmatpush.msra.mxu1 %v2132_v34 }
  0x44   :  { %339 = vmatpush.msra.mxu2 %v2033_v13  ;;  %359 = vmatpush.msra.mxu3 %v2040_v14 }
  0x45   :  { %324 = vmatpush.msra.mxu1 %v2156_v38 }
  0x46   :  { %340 = vmatpush.msra.mxu2 %v2058_v18  ;;  %360 = vmatpush.msra.mxu3 %v2065_v19 }
  0x48   :  { %341 = vmatpush.msra.mxu2 %v2082_v22  ;;  %361 = vmatpush.msra.mxu3 %v2089_v23 }
  0x49   :  { %164 = vmatmul.f32.gmra.mxu2 %v24_v43  ;;  %187 = vmatmul.f32.gmra.mxu3 %v24_v43  ;;  %v2180_v43 = vld [vmem:[%s3325_s2 + $0x108] sm:$0xff] }
  0x4a   :  { %342 = vmatpush.msra.mxu2 %v2107_v27  ;;  %362 = vmatpush.msra.mxu3 %v2114_v30 }
  0x4b   :  { %325 = vmatpush.msra.mxu1 %v2180_v43 }
  0x4c   :  { %343 = vmatpush.msra.mxu2 %v2137_v35  ;;  %363 = vmatpush.msra.mxu3 %v2144_v36 }
  0x4d   :  { %326 = vmatpush.msra.mxu1 %v2206_v48 }
  0x4e   :  { %344 = vmatpush.msra.mxu2 %v2161_v39  ;;  %364 = vmatpush.msra.mxu3 %v2168_v41 }
  0x4f   :  { %327 = vmatpush.msra.mxu1 %v2230_v52 }
  0x50   :  { %345 = vmatpush.msra.mxu2 %v2185_v44  ;;  %365 = vmatpush.msra.mxu3 %v2192_v45 }
  0x51   :  { %328 = vmatpush.msra.mxu1 %v2255_v56 }
  0x52   :  { %346 = vmatpush.msra.mxu2 %v2211_v49  ;;  %366 = vmatpush.msra.mxu3 %v2218_v50 }
  0x53   :  { %329 = vmatpush.msra.mxu1 %v2277_v60 }
  0x54   :  { %347 = vmatpush.msra.mxu2 %v2235_v53  ;;  %367 = vmatpush.msra.mxu3 %v2242_v54 }
  0x55   :  { %330 = vmatpush.msra.mxu1 %v2301_v0 }
  0x56   :  { %348 = vmatpush.msra.mxu2 %v2260_v57  ;;  %368 = vmatpush.msra.mxu3 %v2267_v58 }
  0x58   :  { %349 = vmatpush.msra.mxu2 %v2284_v61  ;;  %369 = vmatpush.msra.mxu3 %v2289_v62 }
  0x5a   :  { %350 = vmatpush.msra.mxu2 %v2306_v1 }
  0xa4   :  { %v116_v7 = vpop.f32.mrf.mxu2  ;;  %v2007_v8 = vpop.f32.mrf.mxu3 }
  0xa5   :  { %3445 = vst [vmem:[#allocation4_spill] sm:$0xff] %v2007_v8  ;;  %v2016_v10 = vadd.f32 %v116_v7, %v91_v3  ;;  %v2318_v7 = vld [vmem:[%s3325_s2 + $0x40] sm:$0xff]  ;;  %v2383_v8 = vld [vmem:[%s3325_s2 + $0x10] sm:$0xff] }
  0xa6   :  { %3463 = vst [vmem:[#allocation22_spill] sm:$0xff] %v2318_v7  ;;  %311 = vmatpush.msra.mxu0 %v2318_v7  ;;  %v2374_v7 = vld [vmem:[%s3325_s2 + $0x8] sm:$0xff] }
  0xa7   :  { %3446 = vst [vmem:[#allocation5_spill] sm:$0xff] %v2016_v10  ;;  %v1536_v15 = vmul.f32 -1.442695, %v2016_v10  ;;  %v2361_v10 = vld [vmem:[%s3325_s2 + $0x38] sm:$0xff] }
  0xa8   :  { %3470 = vst [vmem:[#allocation29_spill] sm:$0xff] %v2361_v10 }
  0xa9   :  { %1559 = vpow2.f32 %v1536_v15  ;;  %v2323_v15 = vld [vmem:[%s3325_s2 + $0x48] sm:$0xff]  ;;  %3472 = vst [vmem:[#allocation31_spill] sm:$0xff] %v2374_v7 }
  0xaa   :  { %3464 = vst [vmem:[#allocation23_spill] sm:$0xff] %v2323_v15  ;;  %331 = vmatpush.msra.mxu1 %v2323_v15  ;;  %v2369_v15 = vld [vmem:[%s3325_s2] sm:$0xff] }
  0xab   :  { %3471 = vst [vmem:[#allocation30_spill] sm:$0xff] %v2369_v15 }
  0xac   :  { %v119_v28 = vpop.f32.mrf.mxu2  ;;  %v142_v29 = vpop.f32.mrf.mxu3  ;;  %3473 = vst [vmem:[#allocation32_spill] sm:$0xff] %v2383_v8 }
  0xad   :  { %v2116_v31 = vadd.f32 %v119_v28, %v91_v3  ;;  %v2120_v32 = vadd.f32 %v142_v29, %v3329_v24  ;;  %v2313_v3 = vld [vmem:[%s3325_s2 + $0x78] sm:$0xff]  ;;  %v2330_v28 = vld [vmem:[%s3325_s2 + $0x50] sm:$0xff]  ;;  %v2344_v24 = vld [vmem:[%s3325_s2 + $0x20] sm:$0xff] }
  0xae   :  { %3462 = vst [vmem:[#allocation21_spill] sm:$0xff] %v2313_v3  ;;  %v2335_v29 = vld [vmem:[%s3325_s2 + $0x58] sm:$0xff]  ;;  %370 = vmatpush.msra.mxu3 %v2313_v3  ;;  %351 = vmatpush.msra.mxu2 %v2330_v28 }
  0xaf   :  { %3447 = vst [vmem:[#allocation6_spill] sm:$0xff] %v2116_v31  ;;  %v1560_v40 = vpop.eup %1559  ;;  %v2356_v31 = vld [vmem:[%s3325_s2 + $0x30] sm:$0xff]  ;;  %312 = vmatpush.msra.mxu0 %v2344_v24 }
  0xb0   :  { %3448 = vst [vmem:[#allocation7_spill] sm:$0xff] %v2120_v32  ;;  %v2194_v46 = vadd.f32 1.0, %v1560_v40  ;;  %v2349_v32 = vld [vmem:[%s3325_s2 + $0x28] sm:$0xff]  ;;  %371 = vmatpush.msra.mxu3 %v2335_v29  ;;  %352 = vmatpush.msra.mxu2 %v2356_v31 }
  0xb1   :  { %3465 = vst [vmem:[#allocation24_spill] sm:$0xff] %v2330_v28  ;;  %332 = vmatpush.msra.mxu1 %v2349_v32  ;;  %313 = vmatpush.msra.mxu0 %v2369_v15 }
  0xb2   :  { %1561 = vrcp.f32 %v2194_v46  ;;  %3466 = vst [vmem:[#allocation25_spill] sm:$0xff] %v2335_v29  ;;  %v2388_v29 = vld [vmem:[%s3325_s2 + $0x18] sm:$0xff]  ;;  %372 = vmatpush.msra.mxu3 %v2361_v10  ;;  %353 = vmatpush.msra.mxu2 %v2383_v8  ;;  %v3356_v10 = vperm.slane %v1989_v2, 2  ;;  %vm264_vm0 = vweird.f32 %v2194_v46 }
  0xb3   :  { %3467 = vst [vmem:[#allocation26_spill] sm:$0xff] %v2344_v24  ;;  %333 = vmatpush.msra.mxu1 %v2374_v7  ;;  %464 = vmatpush.msrb.mxu0 %v1995_v4 }
  0xb4   :  { %3468 = vst [vmem:[#allocation27_spill] sm:$0xff] %v2349_v32  ;;  %v3475_v32 = vperm.slane %v1989_v2, 3  ;;  %373 = vmatpush.msra.mxu3 %v2388_v29  ;;  %504 = vmatpush.msrb.mxu2 %v2005_v6  ;;  %v3483_v2 = vld [vmem:[#allocation22_spill] sm:$0xff] }
  0xb5   :  { %3469 = vst [vmem:[#allocation28_spill] sm:$0xff] %v2356_v31  ;;  %484 = vmatpush.msrb.mxu1 %v2000_v5  ;;  %465 = vmatpush.msrb.mxu0 %v2023_v11 }
  0xb6   :  { %3474 = vst [vmem:[#allocation33_spill] sm:$0xff] %v2388_v29  ;;  %524 = vmatpush.msrb.mxu3 %v2014_v9  ;;  %505 = vmatpush.msrb.mxu2 %v2033_v13 }
  0xb7   :  { %485 = vmatpush.msrb.mxu1 %v2028_v12  ;;  %466 = vmatpush.msrb.mxu0 %v2048_v16 }
  0xb8   :  { %v2337_v40 = vpop.eup %1561  ;;  %525 = vmatpush.msrb.mxu3 %v2040_v14  ;;  %506 = vmatpush.msrb.mxu2 %v2058_v18 }
  0xb9   :  { %v260_v3 = vmul.f32 %v2337_v40, %v2194_v46  ;;  %486 = vmatpush.msrb.mxu1 %v2053_v17  ;;  %vm265_vm1 = vweird.f32 %v2337_v40  ;;  %467 = vmatpush.msrb.mxu0 %v2072_v20 }
  0xba   :  { %526 = vmatpush.msrb.mxu3 %v2065_v19  ;;  %507 = vmatpush.msrb.mxu2 %v2082_v22  ;;  %vm2430_vm2 = vmor %vm264_vm0, %vm265_vm1 }
  0xbb   :  { %v261_v1 = vsub.f32 1.0, %v260_v3  ;;  %487 = vmatpush.msrb.mxu1 %v2077_v21  ;;  %468 = vmatpush.msrb.mxu0 %v2097_v25 }
  0xbc   :  { %527 = vmatpush.msrb.mxu3 %v2089_v23  ;;  %508 = vmatpush.msrb.mxu2 %v2107_v27 }
  0xbd   :  { %488 = vmatpush.msrb.mxu1 %v2102_v26  ;;  %469 = vmatpush.msrb.mxu0 %v2127_v33 }
  0xbe   :  { %528 = vmatpush.msrb.mxu3 %v2114_v30  ;;  %509 = vmatpush.msrb.mxu2 %v2137_v35 }
  0xbf   :  { %489 = vmatpush.msrb.mxu1 %v2132_v34  ;;  %470 = vmatpush.msrb.mxu0 %v2151_v37 }
  0xc0   :  { %529 = vmatpush.msrb.mxu3 %v2144_v36  ;;  %510 = vmatpush.msrb.mxu2 %v2161_v39 }
  0xc1   :  { %490 = vmatpush.msrb.mxu1 %v2156_v38  ;;  %471 = vmatpush.msrb.mxu0 %v2175_v42 }
  0xc2   :  { %530 = vmatpush.msrb.mxu3 %v2168_v41  ;;  %511 = vmatpush.msrb.mxu2 %v2185_v44 }
  0xc3   :  { %491 = vmatpush.msrb.mxu1 %v2180_v43  ;;  %472 = vmatpush.msrb.mxu0 %v2201_v47 }
  0xc4   :  { %v185_v28 = vpop.f32.mrf.mxu3  ;;  %v162_v7 = vpop.f32.mrf.mxu2  ;;  %531 = vmatpush.msrb.mxu3 %v2192_v45  ;;  %512 = vmatpush.msrb.mxu2 %v2211_v49 }
  0xc5   :  { %v2396_v24 = vadd.f32 %v185_v28, %v3475_v32  ;;  %v262_v32 = vmul.f32 %v2337_v40, %v261_v1  ;;  %v2415_v3 = vadd.f32 %v162_v7, %v3356_v10  ;;  %v268_v7 = vand.u32 2147483647, %v2194_v46  ;;  %492 = vmatpush.msrb.mxu1 %v2206_v48  ;;  %473 = vmatpush.msrb.mxu0 %v2225_v51 }
  0xc6   :  { %532 = vmatpush.msrb.mxu3 %v2218_v50  ;;  %513 = vmatpush.msrb.mxu2 %v2235_v53 }
  0xc7   :  { %3476 = vst [vmem:[#allocation34_spill] sm:$0xff] %v2396_v24  ;;  %v1537_v31 = vmul.f32 -1.442695, %v2396_v24  ;;  %v263_v1 = vadd.f32 %v2337_v40, %v262_v32  ;;  %vm269_vm3 = vcmp.eq.f32.partialorder %v268_v7, 8.507059e+37  ;;  %493 = vmatpush.msrb.mxu1 %v2230_v52  ;;  %474 = vmatpush.msrb.mxu0 %v2250_v55 }
  0xc8   :  { %3477 = vst [vmem:[#allocation35_spill] sm:$0xff] %v2415_v3  ;;  %533 = vmatpush.msrb.mxu3 %v2242_v54  ;;  %514 = vmatpush.msrb.mxu2 %v2260_v57 }
  0xc9   :  { %1563 = vpow2.f32 %v1537_v31  ;;  %v270_v31 = vand.u32 2147483648, %v2194_v46  ;;  %v267_v32 = vsel %vm2430_vm2, %v2337_v40, %v263_v1  ;;  %494 = vmatpush.msrb.mxu1 %v2255_v56  ;;  %475 = vmatpush.msrb.mxu0 %v2272_v59 }
  0xca   :  { %1565 = vtanh.f32 %v2415_v3  ;;  %534 = vmatpush.msrb.mxu3 %v2267_v58  ;;  %515 = vmatpush.msrb.mxu2 %v2284_v61  ;;  %v3485_v61 = vld [vmem:[#allocation24_spill] sm:$0xff] }
  0xcb   :  { %v271_v46 = vor.u32 1.1754944e-38, %v270_v31  ;;  %495 = vmatpush.msrb.mxu1 %v2277_v60  ;;  %476 = vmatpush.msrb.mxu0 %v2294_v63 }
  0xcc   :  { %535 = vmatpush.msrb.mxu3 %v2289_v62  ;;  %v3486_v62 = vld [vmem:[#allocation25_spill] sm:$0xff] }
  0xcd   :  { %496 = vmatpush.msrb.mxu1 %v2301_v0  ;;  %477 = vmatpush.msrb.mxu0 %v3483_v2 }
  0xcf   :  { %v1564_v28 = vpop.eup %1563 }
  0xd0   :  { %v278_v24 = vadd.f32 1.0, %v1564_v28  ;;  %v1566_v31 = vpop.eup %1565  ;;  %v272_v28 = vsel %vm269_vm3, %v271_v46, %v267_v32 }
  0xd1   :  { %v2456_v40 = vmul.f32 %v1566_v31, %v272_v28 }
  0xd2   :  { %1567 = vrcp.f32 %v278_v24  ;;  %v290_v46 = vand.u32 2147483648, %v278_v24  ;;  %v288_v31 = vand.u32 2147483647, %v278_v24  ;;  %vm284_vm5 = vweird.f32 %v278_v24 }
  0xd3   :  { %3480 = vst [vmem:[#allocation36_spill] sm:$0xff] %v2456_v40  ;;  %1569 = vtanh.f32 %v2456_v40  ;;  %v3482_v40 = vld [vmem:[#allocation21_spill] sm:$0xff] }
  0xd4   :  { %536 = vmatpush.msrb.mxu3 %v3482_v40  ;;  %v291_v3 = vor.u32 1.1754944e-38, %v290_v46  ;;  %vm289_vm7 = vcmp.eq.f32.partialorder %v288_v31, 8.507059e+37  ;;  %v3489_v40 = vld [vmem:[#allocation28_spill] sm:$0xff]  ;;  %v3490_v46 = vld [vmem:[#allocation29_spill] sm:$0xff] }
  0xd5   :  { %v3497_v31 = vld [vmem:[#allocation20_spill] sm:$0xff] }
  0xd6   :  { %537 = vmatpush.msrb.mxu3 %v3486_v62 }
  0xd8   :  { %v1568_v10 = vpop.eup %1567  ;;  %538 = vmatpush.msrb.mxu3 %v3490_v46 }
  0xd9   :  { %v280_v1 = vmul.f32 %v1568_v10, %v278_v24  ;;  %vm285_vm4 = vweird.f32 %v1568_v10  ;;  %v1570_v63 = vpop.eup %1569  ;;  %v3488_v24 = vld [vmem:[#allocation27_spill] sm:$0xff] }
  0xda   :  { %vm286_vm6 = vmor %vm284_vm5, %vm285_vm4  ;;  %539 = vmatpush.msrb.mxu3 %v2388_v29 }
  0xdb   :  { %v281_v7 = vsub.f32 1.0, %v280_v1  ;;  %v3481_v1 = vld [vmem:[#allocation20_spill] sm:$0xff] }
  0xdc   :  { %516 = vmatpush.msrb.mxu2 %v3481_v1 }
  0xdd   :  { %v282_v32 = vmul.f32 %v1568_v10, %v281_v7  ;;  %v3484_v7 = vld [vmem:[#allocation23_spill] sm:$0xff] }
  0xde   :  { %497 = vmatpush.msrb.mxu1 %v3484_v7  ;;  %517 = vmatpush.msrb.mxu2 %v3485_v61  ;;  %v3491_v7 = vld [vmem:[#allocation31_spill] sm:$0xff] }
  0xdf   :  { %v283_v28 = vadd.f32 %v1568_v10, %v282_v32  ;;  %v3487_v32 = vld [vmem:[#allocation26_spill] sm:$0xff] }
  0xe0   :  { %478 = vmatpush.msrb.mxu0 %v3487_v32  ;;  %498 = vmatpush.msrb.mxu1 %v3488_v24 }
  0xe1   :  { %v287_v60 = vsel %vm286_vm6, %v1568_v10, %v283_v28  ;;  %518 = vmatpush.msrb.mxu2 %v3489_v40  ;;  %v3496_v10 = vld [vmem:[#allocation19_spill] sm:$0xff]  ;;  %v3498_v28 = vld [vmem:[#allocation21_spill] sm:$0xff] }
  0xe2   :  { %v292_v0 = vsel %vm289_vm7, %v291_v3, %v287_v60  ;;  %479 = vmatpush.msrb.mxu0 %v2369_v15  ;;  %499 = vmatpush.msrb.mxu1 %v3491_v7  ;;  %v3492_v60 = vld [vmem:[#allocation15_spill] sm:$0xff]  ;;  %v3495_v3 = vld [vmem:[#allocation18_spill] sm:$0xff] }
  0xe3   :  { %v296_v1 = vmul.f32 %v1570_v63, %v292_v0  ;;  %519 = vmatpush.msrb.mxu2 %v2383_v8  ;;  %v3493_v63 = vld [vmem:[#allocation16_spill] sm:$0xff]  ;;  %v3494_v0 = vld [vmem:[#allocation17_spill] sm:$0xff] }
  0xe5   :  { %297 = vst [vmem:[#allocation2] sm:$0x3] %v296_v1  ;;  %314 = vmatmul.f32.vlgmr.msra.gmra.mxu0 %v296_v1  ;;  %334 = vmatmul.f32.vlgmr.msra.gmra.mxu1 %v296_v1 }
  0xe6   :  { %354 = vmatmul.f32.vlgmr.msra.gmra.mxu2 %v296_v1  ;;  %374 = vmatmul.f32.vlgmr.msra.gmra.mxu3 %v296_v1  ;;  %v3499_v1 = vld [vmem:[#allocation23_spill] sm:$0xff] }
  0xe7   :  { %630 = vmatpush.msra.mxu0 %v1995_v4  ;;  %650 = vmatpush.msra.mxu1 %v2000_v5 }
  0xe8   :  { %670 = vmatpush.msra.mxu2 %v2005_v6  ;;  %690 = vmatpush.msra.mxu3 %v2014_v9 }
  0xe9   :  { %631 = vmatpush.msra.mxu0 %v2023_v11  ;;  %651 = vmatpush.msra.mxu1 %v2028_v12 }
  0xea   :  { %671 = vmatpush.msra.mxu2 %v2033_v13  ;;  %691 = vmatpush.msra.mxu3 %v2040_v14 }
  0xeb   :  { %632 = vmatpush.msra.mxu0 %v2048_v16  ;;  %652 = vmatpush.msra.mxu1 %v2053_v17 }
  0xec   :  { %672 = vmatpush.msra.mxu2 %v2058_v18  ;;  %692 = vmatpush.msra.mxu3 %v2065_v19 }
  0xed   :  { %633 = vmatpush.msra.mxu0 %v2072_v20  ;;  %653 = vmatpush.msra.mxu1 %v2077_v21 }
  0xee   :  { %673 = vmatpush.msra.mxu2 %v2082_v22  ;;  %693 = vmatpush.msra.mxu3 %v2089_v23 }
  0xef   :  { %634 = vmatpush.msra.mxu0 %v2097_v25  ;;  %654 = vmatpush.msra.mxu1 %v2102_v26 }
  0xf0   :  { %674 = vmatpush.msra.mxu2 %v2107_v27  ;;  %694 = vmatpush.msra.mxu3 %v2114_v30 }
  0xf1   :  { %635 = vmatpush.msra.mxu0 %v2127_v33  ;;  %655 = vmatpush.msra.mxu1 %v2132_v34 }
  0xf2   :  { %675 = vmatpush.msra.mxu2 %v2137_v35  ;;  %695 = vmatpush.msra.mxu3 %v2144_v36 }
  0xf3   :  { %636 = vmatpush.msra.mxu0 %v2151_v37  ;;  %656 = vmatpush.msra.mxu1 %v2156_v38 }
  0xf4   :  { %676 = vmatpush.msra.mxu2 %v2161_v39  ;;  %696 = vmatpush.msra.mxu3 %v2168_v41 }
  0xf5   :  { %637 = vmatpush.msra.mxu0 %v2175_v42  ;;  %657 = vmatpush.msra.mxu1 %v2180_v43 }
  0xf6   :  { %677 = vmatpush.msra.mxu2 %v2185_v44  ;;  %697 = vmatpush.msra.mxu3 %v2192_v45 }
  0xf7   :  { %638 = vmatpush.msra.mxu0 %v2201_v47  ;;  %658 = vmatpush.msra.mxu1 %v2206_v48 }
  0xf8   :  { %678 = vmatpush.msra.mxu2 %v2211_v49  ;;  %698 = vmatpush.msra.mxu3 %v2218_v50 }
  0xf9   :  { %639 = vmatpush.msra.mxu0 %v2225_v51  ;;  %659 = vmatpush.msra.mxu1 %v2230_v52 }
  0xfa   :  { %679 = vmatpush.msra.mxu2 %v2235_v53  ;;  %699 = vmatpush.msra.mxu3 %v2242_v54 }
  0xfb   :  { %640 = vmatpush.msra.mxu0 %v2250_v55  ;;  %660 = vmatpush.msra.mxu1 %v2255_v56 }
  0xfc   :  { %680 = vmatpush.msra.mxu2 %v2260_v57  ;;  %700 = vmatpush.msra.mxu3 %v2267_v58 }
  0xfd   :  { %641 = vmatpush.msra.mxu0 %v2272_v59  ;;  %661 = vmatpush.msra.mxu1 %v3492_v60 }
  0xfe   :  { %681 = vmatpush.msra.mxu2 %v3493_v63  ;;  %701 = vmatpush.msra.mxu3 %v3494_v0  ;;  %v3507_v0 = vld [vmem:[#allocation34_spill] sm:$0xff] }
  0xff   :  { %642 = vmatpush.msra.mxu0 %v3495_v3  ;;  %662 = vmatpush.msra.mxu1 %v3496_v10 }
 0x100   :  { %682 = vmatpush.msra.mxu2 %v3497_v31  ;;  %702 = vmatpush.msra.mxu3 %v3498_v28  ;;  %v3503_v28 = vld [vmem:[#allocation4_spill] sm:$0xff] }
 0x101   :  { %643 = vmatpush.msra.mxu0 %v3483_v2  ;;  %663 = vmatpush.msra.mxu1 %v3499_v1  ;;  %v2551_v1 = vpop.f32.mrf.mxu3  ;;  %v3501_v2 = vld [vmem:[#allocation3_spill] sm:$0xff] }
 0x102   :  { %683 = vmatpush.msra.mxu2 %v3485_v61  ;;  %703 = vmatpush.msra.mxu3 %v3486_v62  ;;  %3500 = vst [vmem:[#allocation37_spill] sm:$0xff] %v2551_v1 }
 0x103   :  { %644 = vmatpush.msra.mxu0 %v3487_v32  ;;  %664 = vmatpush.msra.mxu1 %v3488_v24  ;;  %v3502_v32 = vperm.slane %v3501_v2, 1 }
 0x104   :  { %684 = vmatpush.msra.mxu2 %v3489_v40  ;;  %704 = vmatpush.msra.mxu3 %v3490_v46  ;;  %v3505_v46 = vld [vmem:[#allocation5_spill] sm:$0xff] }
 0x105   :  { %645 = vmatpush.msra.mxu0 %v2369_v15  ;;  %665 = vmatpush.msra.mxu1 %v3491_v7  ;;  %v2556_v24 = vadd.f32 %v3503_v28, %v3502_v32  ;;  %v2560_v7 = vpop.f32.mrf.mxu2 }
 0x106   :  { %685 = vmatpush.msra.mxu2 %v2383_v8  ;;  %705 = vmatpush.msra.mxu3 %v2388_v29  ;;  %3506 = vst [vmem:[#allocation38_spill] sm:$0xff] %v2560_v7 }
 0x107   :  { %3504 = vst [vmem:[#allocation4_spill] sm:$0xff] %v2556_v24 }
 0x162   :  { %v315_v61 = vpop.f32.mrf.mxu0  ;;  %v335_v62 = vpop.f32.mrf.mxu1 }
 0x163   :  { %v382_v40 = vrot.slane %v315_v61, 6  ;;  %v383_v31 = vrot.slane %v335_v62, 6 }
 0x165   :  { %v390_v10 = vadd.f32 %v382_v40, %v3505_v46  ;;  %v391_v15 = vadd.f32 %v383_v31, %v2556_v24 }
 0x167   :  { %v1538_v8 = vmul.f32 -1.442695, %v390_v10  ;;  %v1539_v3 = vmul.f32 -1.442695, %v391_v15  ;;  %v3508_v15 = vld [vmem:[#allocation35_spill] sm:$0xff] }
 0x169   :  { %1571 = vpow2.f32 %v1538_v8  ;;  %v375_v29 = vpop.f32.mrf.mxu3  ;;  %v355_v62 = vpop.f32.mrf.mxu2 }
 0x16a   :  { %1573 = vpow2.f32 %v1539_v3  ;;  %v385_v1 = vrot.slane %v375_v29, 6  ;;  %v384_v40 = vrot.slane %v355_v62, 6 }
 0x16c   :  { %v393_v63 = vadd.f32 %v385_v1, %v3507_v0  ;;  %v392_v8 = vadd.f32 %v384_v40, %v3508_v15 }
 0x16e   :  { %v1540_v2 = vmul.f32 -1.442695, %v393_v63 }
 0x16f   :  { %v1572_v60 = vpop.eup %1571 }
 0x170   :  { %v1574_v32 = vpop.eup %1573  ;;  %v397_v28 = vadd.f32 1.0, %v1572_v60  ;;  %1575 = vpow2.f32 %v1540_v2 }
 0x171   :  { %v416_v61 = vadd.f32 1.0, %v1574_v32 }
 0x172   :  { %1577 = vrcp.f32 %v397_v28  ;;  %v409_v0 = vand.u32 2147483648, %v397_v28  ;;  %v407_v32 = vand.u32 2147483647, %v397_v28  ;;  %vm403_vm10 = vweird.f32 %v397_v28 }
 0x173   :  { %1579 = vrcp.f32 %v416_v61  ;;  %v428_v60 = vand.u32 2147483648, %v416_v61  ;;  %v426_v62 = vand.u32 2147483647, %v416_v61  ;;  %vm422_vm11 = vweird.f32 %v416_v61 }
 0x174   :  { %v410_v40 = vor.u32 1.1754944e-38, %v409_v0  ;;  %vm408_vm14 = vcmp.eq.f32.partialorder %v407_v32, 8.507059e+37 }
 0x175   :  { %vm427_vm15 = vcmp.eq.f32.partialorder %v426_v62, 8.507059e+37  ;;  %v3538_v62 = vld [vmem:[#allocation34_spill] sm:$0xff] }
 0x176   :  { %v1576_v31 = vpop.eup %1575 }
 0x177   :  { %v436_v7 = vadd.f32 1.0, %v1576_v31 }
 0x178   :  { %v1578_v10 = vpop.eup %1577 }
 0x179   :  { %v1580_v24 = vpop.eup %1579  ;;  %v399_v3 = vmul.f32 %v1578_v10, %v397_v28  ;;  %1581 = vrcp.f32 %v436_v7  ;;  %vm404_vm8 = vweird.f32 %v1578_v10  ;;  %vm442_vm1 = vweird.f32 %v436_v7 }
 0x17a   :  { %v418_v29 = vmul.f32 %v1580_v24, %v416_v61  ;;  %1583 = vtanh.f32 %v392_v8  ;;  %vm423_vm9 = vweird.f32 %v1580_v24  ;;  %vm405_vm12 = vmor %vm403_vm10, %vm404_vm8  ;;  %v3509_v8 = vld [vmem:[#allocation36_spill] sm:$0xff] }
 0x17b   :  { %v400_v1 = vsub.f32 1.0, %v399_v3  ;;  %vm424_vm13 = vmor %vm422_vm11, %vm423_vm9  ;;  %v429_v3 = vor.u32 1.1754944e-38, %v428_v60  ;;  %v453_v57 = vrot.slane %v3509_v8, 6 }
 0x17c   :  { %v419_v63 = vsub.f32 1.0, %v418_v29 }
 0x17d   :  { %v401_v2 = vmul.f32 %v1578_v10, %v400_v1 }
 0x17e   :  { %v420_v46 = vmul.f32 %v1580_v24, %v419_v63 }
 0x17f   :  { %v1582_v59 = vpop.eup %1581  ;;  %v402_v31 = vadd.f32 %v1578_v10, %v401_v2 }
 0x180   :  { %v421_v15 = vadd.f32 %v1580_v24, %v420_v46  ;;  %v438_v58 = vmul.f32 %v1582_v59, %v436_v7  ;;  %v1584_v1 = vpop.eup %1583  ;;  %vm443_vm0 = vweird.f32 %v1582_v59  ;;  %v448_v46 = vand.u32 2147483648, %v436_v7 }
 0x181   :  { %v406_v29 = vsel %vm405_vm12, %v1578_v10, %v402_v31  ;;  %v446_v10 = vand.u32 2147483647, %v436_v7  ;;  %vm444_vm2 = vmor %vm442_vm1, %vm443_vm0 }
 0x182   :  { %v411_v56 = vsel %vm408_vm14, %v410_v40, %v406_v29  ;;  %v425_v55 = vsel %vm424_vm13, %v1580_v24, %v421_v15  ;;  %v439_v63 = vsub.f32 1.0, %v438_v58  ;;  %v449_v32 = vor.u32 1.1754944e-38, %v448_v46 }
 0x183   :  { %v430_v54 = vsel %vm427_vm15, %v429_v3, %v425_v55  ;;  %v456_v53 = vmul.f32 %v1584_v1, %v411_v56  ;;  %vm447_vm3 = vcmp.eq.f32.partialorder %v446_v10, 8.507059e+37  ;;  %v3539_v10 = vld [vmem:[#allocation35_spill] sm:$0xff] }
 0x184   :  { %v455_v2 = vmul.f32 %v453_v57, %v430_v54  ;;  %v440_v28 = vmul.f32 %v1582_v59, %v439_v63 }
 0x186   :  { %v2565_v61 = vadd.f32 %v456_v53, %v455_v2  ;;  %v441_v0 = vadd.f32 %v1582_v59, %v440_v28  ;;  %v3537_v53 = vld [vmem:[#allocation4_spill] sm:$0xff] }
 0x188   :  { %1585 = vtanh.f32 %v2565_v61  ;;  %v445_v60 = vsel %vm444_vm2, %v1582_v59, %v441_v0 }
 0x189   :  { %v450_v15 = vsel %vm447_vm3, %v449_v32, %v445_v60 }
 0x18e   :  { %v1586_v24 = vpop.eup %1585 }
 0x18f   :  { %v459_v58 = vmul.f32 %v1586_v24, %v450_v15 }
 0x191   :  { %460 = vst [vmem:[#allocation2] sm:$0xc] %v459_v58  ;;  %v462_v55 = vrot.slane %v459_v58, 2 }
 0x193   :  { %480 = vmatmul.f32.vlgmr.msrb.gmra.mxu0 %v462_v55  ;;  %500 = vmatmul.f32.vlgmr.msrb.gmra.mxu1 %v462_v55 }
 0x194   :  { %520 = vmatmul.f32.vlgmr.msrb.gmra.mxu2 %v462_v55  ;;  %540 = vmatmul.f32.vlgmr.msrb.gmra.mxu3 %v462_v55 }
 0x195   :  { %796 = vmatpush.msrb.mxu0 %v1995_v4  ;;  %816 = vmatpush.msrb.mxu1 %v2000_v5  ;;  %v3510_v4 = vld [vmem:[#allocation8_spill] sm:$0xff]  ;;  %v3511_v5 = vld [vmem:[#allocation9_spill] sm:$0xff] }
 0x196   :  { %836 = vmatpush.msrb.mxu2 %v2005_v6  ;;  %856 = vmatpush.msrb.mxu3 %v2014_v9  ;;  %v3512_v6 = vld [vmem:[#allocation10_spill] sm:$0xff]  ;;  %v3513_v9 = vld [vmem:[#allocation11_spill] sm:$0xff] }
 0x197   :  { %797 = vmatpush.msrb.mxu0 %v2023_v11  ;;  %817 = vmatpush.msrb.mxu1 %v2028_v12  ;;  %v3514_v11 = vld [vmem:[#allocation12_spill] sm:$0xff]  ;;  %v3515_v12 = vld [vmem:[#allocation13_spill] sm:$0xff] }
 0x198   :  { %837 = vmatpush.msrb.mxu2 %v2033_v13  ;;  %857 = vmatpush.msrb.mxu3 %v2040_v14  ;;  %v3516_v13 = vld [vmem:[#allocation14_spill] sm:$0xff]  ;;  %v3517_v14 = vld [vmem:[#allocation15_spill] sm:$0xff] }
 0x199   :  { %798 = vmatpush.msrb.mxu0 %v2048_v16  ;;  %818 = vmatpush.msrb.mxu1 %v2053_v17  ;;  %v3518_v16 = vld [vmem:[#allocation16_spill] sm:$0xff]  ;;  %v3519_v17 = vld [vmem:[#allocation17_spill] sm:$0xff] }
 0x19a   :  { %838 = vmatpush.msrb.mxu2 %v2058_v18  ;;  %858 = vmatpush.msrb.mxu3 %v2065_v19  ;;  %v3520_v18 = vld [vmem:[#allocation18_spill] sm:$0xff]  ;;  %v3521_v19 = vld [vmem:[#allocation19_spill] sm:$0xff] }
 0x19b   :  { %799 = vmatpush.msrb.mxu0 %v2072_v20  ;;  %819 = vmatpush.msrb.mxu1 %v2077_v21  ;;  %v3522_v20 = vld [vmem:[#allocation20_spill] sm:$0xff]  ;;  %v3523_v21 = vld [vmem:[#allocation21_spill] sm:$0xff] }
 0x19c   :  { %839 = vmatpush.msrb.mxu2 %v2082_v22  ;;  %859 = vmatpush.msrb.mxu3 %v2089_v23  ;;  %v3524_v22 = vld [vmem:[#allocation22_spill] sm:$0xff]  ;;  %v3525_v23 = vld [vmem:[#allocation23_spill] sm:$0xff] }
 0x19d   :  { %800 = vmatpush.msrb.mxu0 %v2097_v25  ;;  %820 = vmatpush.msrb.mxu1 %v2102_v26  ;;  %v3526_v25 = vld [vmem:[#allocation24_spill] sm:$0xff]  ;;  %v3527_v26 = vld [vmem:[#allocation25_spill] sm:$0xff] }
 0x19e   :  { %840 = vmatpush.msrb.mxu2 %v2107_v27  ;;  %860 = vmatpush.msrb.mxu3 %v2114_v30  ;;  %v3528_v27 = vld [vmem:[#allocation26_spill] sm:$0xff]  ;;  %v3529_v30 = vld [vmem:[#allocation27_spill] sm:$0xff] }
 0x19f   :  { %801 = vmatpush.msrb.mxu0 %v2127_v33  ;;  %821 = vmatpush.msrb.mxu1 %v2132_v34  ;;  %v3530_v33 = vld [vmem:[#allocation28_spill] sm:$0xff]  ;;  %v3531_v34 = vld [vmem:[#allocation29_spill] sm:$0xff] }
 0x1a0   :  { %841 = vmatpush.msrb.mxu2 %v2137_v35  ;;  %861 = vmatpush.msrb.mxu3 %v2144_v36  ;;  %v3532_v35 = vld [vmem:[#allocation30_spill] sm:$0xff]  ;;  %v3533_v36 = vld [vmem:[#allocation31_spill] sm:$0xff] }
 0x1a1   :  { %802 = vmatpush.msrb.mxu0 %v2151_v37  ;;  %822 = vmatpush.msrb.mxu1 %v2156_v38  ;;  %v3534_v37 = vld [vmem:[#allocation32_spill] sm:$0xff]  ;;  %v3535_v38 = vld [vmem:[#allocation33_spill] sm:$0xff] }
 0x1a2   :  { %842 = vmatpush.msrb.mxu2 %v2161_v39  ;;  %862 = vmatpush.msrb.mxu3 %v2168_v41 }
 0x1a3   :  { %803 = vmatpush.msrb.mxu0 %v2175_v42  ;;  %823 = vmatpush.msrb.mxu1 %v2180_v43 }
 0x1a4   :  { %843 = vmatpush.msrb.mxu2 %v2185_v44  ;;  %863 = vmatpush.msrb.mxu3 %v2192_v45  ;;  %v3536_v44 = vld [vmem:[#allocation5_spill] sm:$0xff] }
 0x1a5   :  { %804 = vmatpush.msrb.mxu0 %v2201_v47  ;;  %824 = vmatpush.msrb.mxu1 %v2206_v48 }
 0x1a6   :  { %844 = vmatpush.msrb.mxu2 %v2211_v49  ;;  %864 = vmatpush.msrb.mxu3 %v2218_v50 }
 0x1a7   :  { %805 = vmatpush.msrb.mxu0 %v2225_v51  ;;  %825 = vmatpush.msrb.mxu1 %v2230_v52 }
 0x1a8   :  { %845 = vmatpush.msrb.mxu2 %v3510_v4  ;;  %865 = vmatpush.msrb.mxu3 %v3511_v5 }
 0x1a9   :  { %806 = vmatpush.msrb.mxu0 %v3512_v6  ;;  %826 = vmatpush.msrb.mxu1 %v3513_v9 }
 0x1aa   :  { %846 = vmatpush.msrb.mxu2 %v3514_v11  ;;  %866 = vmatpush.msrb.mxu3 %v3515_v12 }
 0x1ab   :  { %807 = vmatpush.msrb.mxu0 %v3516_v13  ;;  %827 = vmatpush.msrb.mxu1 %v3517_v14 }
 0x1ac   :  { %847 = vmatpush.msrb.mxu2 %v3518_v16  ;;  %867 = vmatpush.msrb.mxu3 %v3519_v17 }
 0x1ad   :  { %808 = vmatpush.msrb.mxu0 %v3520_v18  ;;  %828 = vmatpush.msrb.mxu1 %v3521_v19 }
 0x1ae   :  { %848 = vmatpush.msrb.mxu2 %v3522_v20  ;;  %868 = vmatpush.msrb.mxu3 %v3523_v21 }
 0x1af   :  { %809 = vmatpush.msrb.mxu0 %v3524_v22  ;;  %829 = vmatpush.msrb.mxu1 %v3525_v23 }
 0x1b0   :  { %849 = vmatpush.msrb.mxu2 %v3526_v25  ;;  %869 = vmatpush.msrb.mxu3 %v3527_v26 }
 0x1b1   :  { %810 = vmatpush.msrb.mxu0 %v3528_v27  ;;  %830 = vmatpush.msrb.mxu1 %v3529_v30 }
 0x1b2   :  { %850 = vmatpush.msrb.mxu2 %v3530_v33  ;;  %870 = vmatpush.msrb.mxu3 %v3531_v34 }
 0x1b3   :  { %811 = vmatpush.msrb.mxu0 %v3532_v35  ;;  %831 = vmatpush.msrb.mxu1 %v3533_v36 }
 0x1b4   :  { %851 = vmatpush.msrb.mxu2 %v3534_v37  ;;  %871 = vmatpush.msrb.mxu3 %v3535_v38 }
 0x210   :  { %v481_v39 = vpop.f32.mrf.mxu0  ;;  %v501_v41 = vpop.f32.mrf.mxu1 }
 0x211   :  { %v548_v42 = vrot.slane %v481_v39, 4  ;;  %v549_v43 = vrot.slane %v501_v41, 4 }
 0x213   :  { %v556_v45 = vadd.f32 %v548_v42, %v3536_v44  ;;  %v557_v54 = vadd.f32 %v549_v43, %v3537_v53 }
 0x215   :  { %v1541_v56 = vmul.f32 -1.442695, %v556_v45  ;;  %v1542_v57 = vmul.f32 -1.442695, %v557_v54 }
 0x217   :  { %1587 = vpow2.f32 %v1541_v56  ;;  %v541_v59 = vpop.f32.mrf.mxu3  ;;  %v521_v63 = vpop.f32.mrf.mxu2 }
 0x218   :  { %1589 = vpow2.f32 %v1542_v57  ;;  %v551_v7 = vrot.slane %v541_v59, 4  ;;  %v550_v2 = vrot.slane %v521_v63, 4 }
 0x21a   :  { %v559_v31 = vadd.f32 %v551_v7, %v3538_v62  ;;  %v558_v60 = vadd.f32 %v550_v2, %v3539_v10 }
 0x21c   :  { %v1543_v40 = vmul.f32 -1.442695, %v559_v31 }
 0x21d   :  { %v1588_v3 = vpop.eup %1587 }
 0x21e   :  { %v1590_v29 = vpop.eup %1589  ;;  %v563_v8 = vadd.f32 1.0, %v1588_v3  ;;  %1591 = vpow2.f32 %v1543_v40  ;;  %v619_v40 = vrot.slane %v2565_v61, 6 }
 0x21f   :  { %v582_v1 = vadd.f32 1.0, %v1590_v29 }
 0x220   :  { %1593 = vrcp.f32 %v563_v8  ;;  %v575_v39 = vand.u32 2147483648, %v563_v8  ;;  %v573_v43 = vand.u32 2147483647, %v563_v8  ;;  %vm569_vm6 = vweird.f32 %v563_v8 }
 0x221   :  { %1595 = vrcp.f32 %v582_v1  ;;  %v594_v41 = vand.u32 2147483648, %v582_v1  ;;  %v592_v54 = vand.u32 2147483647, %v582_v1  ;;  %vm588_vm7 = vweird.f32 %v582_v1 }
 0x222   :  { %v576_v59 = vor.u32 1.1754944e-38, %v575_v39  ;;  %vm574_vm10 = vcmp.eq.f32.partialorder %v573_v43, 8.507059e+37 }
 0x223   :  { %v595_v3 = vor.u32 1.1754944e-38, %v594_v41  ;;  %vm593_vm11 = vcmp.eq.f32.partialorder %v592_v54, 8.507059e+37  ;;  %v2643_v54 = vld [vmem:[%s3325_s2 + $0x1e0] sm:$0xff] }
 0x224   :  { %v1592_v28 = vpop.eup %1591 }
 0x225   :  { %v602_v0 = vadd.f32 1.0, %v1592_v28 }
 0x226   :  { %v1594_v46 = vpop.eup %1593 }
 0x227   :  { %v1596_v32 = vpop.eup %1595  ;;  %v565_v24 = vmul.f32 %v1594_v46, %v563_v8  ;;  %1597 = vrcp.f32 %v602_v0  ;;  %vm570_vm4 = vweird.f32 %v1594_v46  ;;  %v614_v61 = vand.u32 2147483648, %v602_v0 }
 0x228   :  { %v584_v15 = vmul.f32 %v1596_v32, %v582_v1  ;;  %1599 = vtanh.f32 %v558_v60  ;;  %vm589_vm5 = vweird.f32 %v1596_v32  ;;  %vm571_vm8 = vmor %vm569_vm6, %vm570_vm4  ;;  %vm608_vm13 = vweird.f32 %v602_v0 }
 0x229   :  { %v566_v58 = vsub.f32 1.0, %v565_v24  ;;  %vm590_vm9 = vmor %vm588_vm7, %vm589_vm5  ;;  %v612_v39 = vand.u32 2147483647, %v602_v0  ;;  %v615_v41 = vor.u32 1.1754944e-38, %v614_v61  ;;  %v2757_v61 = vld [vmem:[%s3325_s2 + $0x178] sm:$0xff] }
 0x22a   :  { %v585_v55 = vsub.f32 1.0, %v584_v15 }
 0x22b   :  { %v567_v42 = vmul.f32 %v1594_v46, %v566_v58  ;;  %vm613_vm15 = vcmp.eq.f32.partialorder %v612_v39, 8.507059e+37  ;;  %v2763_v39 = vld [vmem:[%s3325_s2 + $0x140] sm:$0xff] }
 0x22c   :  { %v586_v45 = vmul.f32 %v1596_v32, %v585_v55 }
 0x22d   :  { %v1598_v56 = vpop.eup %1597  ;;  %v568_v57 = vadd.f32 %v1594_v46, %v567_v42 }
 0x22e   :  { %v587_v7 = vadd.f32 %v1596_v32, %v586_v45  ;;  %v604_v31 = vmul.f32 %v1598_v56, %v602_v0  ;;  %v1600_v63 = vpop.eup %1599  ;;  %vm609_vm12 = vweird.f32 %v1598_v56  ;;  %v2649_v0 = vld [vmem:[%s3325_s2 + $0x1e8] sm:$0xff] }
 0x22f   :  { %v572_v29 = vsel %vm571_vm8, %v1594_v46, %v568_v57  ;;  %vm610_vm14 = vmor %vm608_vm13, %vm609_vm12  ;;  %v2661_v57 = vld [vmem:[%s3325_s2 + $0x1f8] sm:$0xff] }
 0x230   :  { %v577_v2 = vsel %vm574_vm10, %v576_v59, %v572_v29  ;;  %v591_v28 = vsel %vm590_vm9, %v1596_v32, %v587_v7  ;;  %v605_v60 = vsub.f32 1.0, %v604_v31  ;;  %v2667_v59 = vld [vmem:[%s3325_s2 + $0x1c0] sm:$0xff]  ;;  %v2673_v7 = vld [vmem:[%s3325_s2 + $0x1c8] sm:$0xff]  ;;  %v2679_v31 = vld [vmem:[%s3325_s2 + $0x1d0] sm:$0xff] }
 0x231   :  { %v596_v24 = vsel %vm593_vm11, %v595_v3, %v591_v28  ;;  %v622_v15 = vmul.f32 %v1600_v63, %v577_v2  ;;  %v2691_v3 = vld [vmem:[%s3325_s2 + $0x1a0] sm:$0xff]  ;;  %v2697_v29 = vld [vmem:[%s3325_s2 + $0x1a8] sm:$0xff]  ;;  %v2703_v63 = vld [vmem:[%s3325_s2 + $0x1b0] sm:$0xff] }
 0x232   :  { %v621_v58 = vmul.f32 %v619_v40, %v596_v24  ;;  %v606_v8 = vmul.f32 %v1598_v56, %v605_v60  ;;  %v2685_v40 = vld [vmem:[%s3325_s2 + $0x1d8] sm:$0xff]  ;;  %v2715_v28 = vld [vmem:[%s3325_s2 + $0x180] sm:$0xff]  ;;  %v2721_v60 = vld [vmem:[%s3325_s2 + $0x188] sm:$0xff] }
 0x233   :  { %v2709_v2 = vld [vmem:[%s3325_s2 + $0x1b8] sm:$0xff]  ;;  %v2727_v24 = vld [vmem:[%s3325_s2 + $0x190] sm:$0xff] }
 0x234   :  { %v2637_v1 = vadd.f32 %v622_v15, %v621_v58  ;;  %v607_v55 = vadd.f32 %v1598_v56, %v606_v8  ;;  %v2733_v15 = vld [vmem:[%s3325_s2 + $0x198] sm:$0xff]  ;;  %v2739_v58 = vld [vmem:[%s3325_s2 + $0x160] sm:$0xff]  ;;  %v2745_v8 = vld [vmem:[%s3325_s2 + $0x168] sm:$0xff] }
 0x236   :  { %1601 = vtanh.f32 %v2637_v1  ;;  %v611_v46 = vsel %vm610_vm14, %v1598_v56, %v607_v55  ;;  %v2655_v56 = vld [vmem:[%s3325_s2 + $0x1f0] sm:$0xff] }
 0x237   :  { %v616_v42 = vsel %vm613_vm15, %v615_v41, %v611_v46  ;;  %v2751_v55 = vld [vmem:[%s3325_s2 + $0x170] sm:$0xff]  ;;  %v2769_v46 = vld [vmem:[%s3325_s2 + $0x148] sm:$0xff] }
 0x238   :  { %v2775_v41 = vld [vmem:[%s3325_s2 + $0x150] sm:$0xff] }
 0x23c   :  { %v1602_v32 = vpop.eup %1601 }
 0x23d   :  { %v625_v43 = vmul.f32 %v1602_v32, %v616_v42  ;;  %v2781_v32 = vld [vmem:[%s3325_s2 + $0x158] sm:$0xff]  ;;  %v2787_v42 = vld [vmem:[%s3325_s2 + $0x120] sm:$0xff] }
 0x23e   :  { %3540 = vst [vmem:[#allocation36_spill] sm:$0xff] %v2781_v32 }
 0x23f   :  { %626 = vst [vmem:[#allocation2] sm:$0x30] %v625_v43  ;;  %v628_v45 = vrot.slane %v625_v43, 4  ;;  %v2793_v43 = vld [vmem:[%s3325_s2 + $0x128] sm:$0xff] }
 0x240   :  { %3541 = vst [vmem:[#allocation8_spill] sm:$0xff] %v2787_v42 }
 0x241   :  { %646 = vmatmul.f32.vlgmr.msra.gmra.mxu0 %v628_v45  ;;  %666 = vmatmul.f32.vlgmr.msra.gmra.mxu1 %v628_v45  ;;  %3542 = vst [vmem:[#allocation9_spill] sm:$0xff] %v2793_v43 }
 0x242   :  { %686 = vmatmul.f32.vlgmr.msra.gmra.mxu2 %v628_v45  ;;  %706 = vmatmul.f32.vlgmr.msra.gmra.mxu3 %v628_v45  ;;  %v2799_v45 = vld [vmem:[%s3325_s2 + $0x130] sm:$0xff] }
 0x243   :  { %947 = vmatpush.msra.mxu0 %v2643_v54  ;;  %967 = vmatpush.msra.mxu1 %v2649_v0  ;;  %3543 = vst [vmem:[#allocation10_spill] sm:$0xff] %v2799_v45 }
 0x244   :  { %987 = vmatpush.msra.mxu2 %v2655_v56  ;;  %1007 = vmatpush.msra.mxu3 %v2661_v57 }
 0x245   :  { %948 = vmatpush.msra.mxu0 %v2667_v59  ;;  %968 = vmatpush.msra.mxu1 %v2673_v7 }
 0x246   :  { %988 = vmatpush.msra.mxu2 %v2679_v31  ;;  %1008 = vmatpush.msra.mxu3 %v2685_v40 }
 0x247   :  { %949 = vmatpush.msra.mxu0 %v2691_v3  ;;  %969 = vmatpush.msra.mxu1 %v2697_v29 }
 0x248   :  { %989 = vmatpush.msra.mxu2 %v2703_v63  ;;  %1009 = vmatpush.msra.mxu3 %v2709_v2 }
 0x249   :  { %950 = vmatpush.msra.mxu0 %v2715_v28  ;;  %970 = vmatpush.msra.mxu1 %v2721_v60 }
 0x24a   :  { %990 = vmatpush.msra.mxu2 %v2727_v24  ;;  %1010 = vmatpush.msra.mxu3 %v2733_v15 }
 0x24b   :  { %951 = vmatpush.msra.mxu0 %v2739_v58  ;;  %971 = vmatpush.msra.mxu1 %v2745_v8 }
 0x24c   :  { %991 = vmatpush.msra.mxu2 %v2751_v55  ;;  %1011 = vmatpush.msra.mxu3 %v2757_v61 }
 0x24d   :  { %952 = vmatpush.msra.mxu0 %v2763_v39  ;;  %972 = vmatpush.msra.mxu1 %v2769_v46 }
 0x24e   :  { %992 = vmatpush.msra.mxu2 %v2775_v41  ;;  %1012 = vmatpush.msra.mxu3 %v2781_v32  ;;  %v2805_v32 = vld [vmem:[%s3325_s2 + $0x138] sm:$0xff] }
 0x24f   :  { %953 = vmatpush.msra.mxu0 %v2787_v42  ;;  %973 = vmatpush.msra.mxu1 %v2793_v43  ;;  %3544 = vst [vmem:[#allocation11_spill] sm:$0xff] %v2805_v32  ;;  %v2811_v42 = vld [vmem:[%s3325_s2 + $0x100] sm:$0xff]  ;;  %v2817_v43 = vld [vmem:[%s3325_s2 + $0x108] sm:$0xff] }
 0x250   :  { %993 = vmatpush.msra.mxu2 %v2799_v45  ;;  %1013 = vmatpush.msra.mxu3 %v2805_v32  ;;  %v2823_v45 = vld [vmem:[%s3325_s2 + $0x110] sm:$0xff]  ;;  %v2829_v32 = vld [vmem:[%s3325_s2 + $0x118] sm:$0xff] }
 0x251   :  { %954 = vmatpush.msra.mxu0 %v2811_v42  ;;  %974 = vmatpush.msra.mxu1 %v2817_v43 }
 0x252   :  { %994 = vmatpush.msra.mxu2 %v2823_v45  ;;  %1014 = vmatpush.msra.mxu3 %v2829_v32 }
 0x253   :  { %955 = vmatpush.msra.mxu0 %v2201_v47  ;;  %975 = vmatpush.msra.mxu1 %v2206_v48 }
 0x254   :  { %995 = vmatpush.msra.mxu2 %v2211_v49  ;;  %1015 = vmatpush.msra.mxu3 %v2218_v50 }
 0x255   :  { %956 = vmatpush.msra.mxu0 %v2225_v51  ;;  %976 = vmatpush.msra.mxu1 %v2230_v52 }
 0x256   :  { %996 = vmatpush.msra.mxu2 %v3510_v4  ;;  %1016 = vmatpush.msra.mxu3 %v3511_v5 }
 0x257   :  { %957 = vmatpush.msra.mxu0 %v3512_v6  ;;  %977 = vmatpush.msra.mxu1 %v3513_v9 }
 0x258   :  { %997 = vmatpush.msra.mxu2 %v3514_v11  ;;  %1017 = vmatpush.msra.mxu3 %v3515_v12 }
 0x259   :  { %958 = vmatpush.msra.mxu0 %v3516_v13  ;;  %978 = vmatpush.msra.mxu1 %v3517_v14 }
 0x25a   :  { %998 = vmatpush.msra.mxu2 %v3518_v16  ;;  %1018 = vmatpush.msra.mxu3 %v3519_v17 }
 0x25b   :  { %959 = vmatpush.msra.mxu0 %v3520_v18  ;;  %979 = vmatpush.msra.mxu1 %v3521_v19 }
 0x25c   :  { %999 = vmatpush.msra.mxu2 %v3522_v20  ;;  %1019 = vmatpush.msra.mxu3 %v3523_v21 }
 0x25d   :  { %960 = vmatpush.msra.mxu0 %v3524_v22  ;;  %980 = vmatpush.msra.mxu1 %v3525_v23 }
 0x25e   :  { %1000 = vmatpush.msra.mxu2 %v3526_v25  ;;  %1020 = vmatpush.msra.mxu3 %v3527_v26 }
 0x25f   :  { %961 = vmatpush.msra.mxu0 %v3528_v27  ;;  %981 = vmatpush.msra.mxu1 %v3529_v30 }
 0x260   :  { %1001 = vmatpush.msra.mxu2 %v3530_v33  ;;  %1021 = vmatpush.msra.mxu3 %v3531_v34 }
 0x261   :  { %962 = vmatpush.msra.mxu0 %v3532_v35  ;;  %982 = vmatpush.msra.mxu1 %v3533_v36 }
 0x262   :  { %1002 = vmatpush.msra.mxu2 %v3534_v37  ;;  %1022 = vmatpush.msra.mxu3 %v3535_v38 }
 0x2be   :  { %v647_v47 = vpop.f32.mrf.mxu0  ;;  %v667_v48 = vpop.f32.mrf.mxu1 }
 0x2bf   :  { %v714_v49 = vrot.slane %v647_v47, 2  ;;  %v715_v50 = vrot.slane %v667_v48, 2 }
 0x2c1   :  { %v722_v51 = vadd.f32 %v714_v49, %v3536_v44  ;;  %v723_v52 = vadd.f32 %v715_v50, %v3537_v53  ;;  %v785_v49 = vrot.slane %v2637_v1, 6 }
 0x2c3   :  { %v1544_v4 = vmul.f32 -1.442695, %v722_v51  ;;  %v1545_v5 = vmul.f32 -1.442695, %v723_v52 }
 0x2c5   :  { %1603 = vpow2.f32 %v1544_v4  ;;  %v707_v6 = vpop.f32.mrf.mxu3  ;;  %v687_v18 = vpop.f32.mrf.mxu2 }
 0x2c6   :  { %1605 = vpow2.f32 %v1545_v5  ;;  %v717_v9 = vrot.slane %v707_v6, 2  ;;  %v716_v19 = vrot.slane %v687_v18, 2 }
 0x2c8   :  { %v725_v11 = vadd.f32 %v717_v9, %v3538_v62  ;;  %v724_v23 = vadd.f32 %v716_v19, %v3539_v10 }
 0x2ca   :  { %v1546_v12 = vmul.f32 -1.442695, %v725_v11 }
 0x2cb   :  { %v1604_v13 = vpop.eup %1603 }
 0x2cc   :  { %v1606_v14 = vpop.eup %1605  ;;  %v729_v16 = vadd.f32 1.0, %v1604_v13  ;;  %1607 = vpow2.f32 %v1546_v12 }
 0x2cd   :  { %v748_v17 = vadd.f32 1.0, %v1606_v14 }
 0x2ce   :  { %1609 = vrcp.f32 %v729_v16  ;;  %v741_v34 = vand.u32 2147483648, %v729_v16  ;;  %v739_v37 = vand.u32 2147483647, %v729_v16  ;;  %vm735_vm2 = vweird.f32 %v729_v16 }
 0x2cf   :  { %1611 = vrcp.f32 %v748_v17  ;;  %v760_v35 = vand.u32 2147483648, %v748_v17  ;;  %v758_v44 = vand.u32 2147483647, %v748_v17  ;;  %vm754_vm3 = vweird.f32 %v748_v17 }
 0x2d0   :  { %v742_v10 = vor.u32 1.1754944e-38, %v741_v34  ;;  %vm740_vm6 = vcmp.eq.f32.partialorder %v739_v37, 8.507059e+37  ;;  %v2907_v34 = vld [vmem:[%s3325_s2 + $0xe0] sm:$0xff]  ;;  %v2925_v37 = vld [vmem:[%s3325_s2 + $0xf8] sm:$0xff] }
 0x2d1   :  { %v761_v50 = vor.u32 1.1754944e-38, %v760_v35  ;;  %vm759_vm7 = vcmp.eq.f32.partialorder %v758_v44, 8.507059e+37  ;;  %v2913_v35 = vld [vmem:[%s3325_s2 + $0xe8] sm:$0xff] }
 0x2d2   :  { %v1608_v20 = vpop.eup %1607  ;;  %v2937_v44 = vld [vmem:[%s3325_s2 + $0xc8] sm:$0xff] }
 0x2d3   :  { %v768_v21 = vadd.f32 1.0, %v1608_v20 }
 0x2d4   :  { %v1610_v22 = vpop.eup %1609 }
 0x2d5   :  { %v1612_v25 = vpop.eup %1611  ;;  %v731_v26 = vmul.f32 %v1610_v22, %v729_v16  ;;  %1613 = vrcp.f32 %v768_v21  ;;  %vm736_vm0 = vweird.f32 %v1610_v22  ;;  %v780_v1 = vand.u32 2147483648, %v768_v21 }
 0x2d6   :  { %v750_v27 = vmul.f32 %v1612_v25, %v748_v17  ;;  %1615 = vtanh.f32 %v724_v23  ;;  %vm755_vm1 = vweird.f32 %v1612_v25  ;;  %vm737_vm4 = vmor %vm735_vm2, %vm736_vm0  ;;  %vm774_vm9 = vweird.f32 %v768_v21 }
 0x2d7   :  { %v732_v30 = vsub.f32 1.0, %v731_v26  ;;  %vm756_vm5 = vmor %vm754_vm3, %vm755_vm1  ;;  %v778_v17 = vand.u32 2147483647, %v768_v21  ;;  %v781_v19 = vor.u32 1.1754944e-38, %v780_v1  ;;  %v3546_v26 = vld [vmem:[#allocation8_spill] sm:$0xff] }
 0x2d8   :  { %v751_v33 = vsub.f32 1.0, %v750_v27  ;;  %v3547_v27 = vld [vmem:[#allocation9_spill] sm:$0xff]  ;;  %v3045_v1 = vld [vmem:[%s3325_s2 + $0x58] sm:$0xff] }
 0x2d9   :  { %v733_v36 = vmul.f32 %v1610_v22, %v732_v30  ;;  %vm779_vm11 = vcmp.eq.f32.partialorder %v778_v17, 8.507059e+37  ;;  %v3548_v30 = vld [vmem:[#allocation10_spill] sm:$0xff]  ;;  %3567 = vst [vmem:[#allocation29_spill] sm:$0xff] %v3045_v1  ;;  %v3051_v17 = vld [vmem:[%s3325_s2 + $0x20] sm:$0xff] }
 0x2da   :  { %v752_v38 = vmul.f32 %v1612_v25, %v751_v33  ;;  %v3549_v33 = vld [vmem:[#allocation11_spill] sm:$0xff]  ;;  %3568 = vst [vmem:[#allocation30_spill] sm:$0xff] %v3051_v17 }
 0x2db   :  { %v1614_v53 = vpop.eup %1613  ;;  %v734_v62 = vadd.f32 %v1610_v22, %v733_v36  ;;  %v2919_v36 = vld [vmem:[%s3325_s2 + $0xf0] sm:$0xff] }
 0x2dc   :  { %v753_v47 = vadd.f32 %v1612_v25, %v752_v38  ;;  %v770_v48 = vmul.f32 %v1614_v53, %v768_v21  ;;  %v1616_v52 = vpop.eup %1615  ;;  %vm775_vm8 = vweird.f32 %v1614_v53  ;;  %v3545_v21 = vld [vmem:[#allocation36_spill] sm:$0xff]  ;;  %v2931_v38 = vld [vmem:[%s3325_s2 + $0xc0] sm:$0xff] }
 0x2dd   :  { %v738_v51 = vsel %vm737_vm4, %v1610_v22, %v734_v62  ;;  %vm776_vm10 = vmor %vm774_vm9, %vm775_vm8  ;;  %v2949_v62 = vld [vmem:[%s3325_s2 + $0xd8] sm:$0xff] }
 0x2de   :  { %v743_v4 = vsel %vm740_vm6, %v742_v10, %v738_v51  ;;  %v757_v5 = vsel %vm756_vm5, %v1612_v25, %v753_v47  ;;  %v771_v6 = vsub.f32 1.0, %v770_v48  ;;  %3551 = vst [vmem:[#allocation13_spill] sm:$0xff] %v2949_v62  ;;  %v2955_v10 = vld [vmem:[%s3325_s2 + $0xa0] sm:$0xff]  ;;  %v2961_v47 = vld [vmem:[%s3325_s2 + $0xa8] sm:$0xff]  ;;  %v2967_v48 = vld [vmem:[%s3325_s2 + $0xb0] sm:$0xff] }
 0x2df   :  { %v762_v9 = vsel %vm759_vm7, %v761_v50, %v757_v5  ;;  %v788_v11 = vmul.f32 %v1616_v52, %v743_v4  ;;  %3552 = vst [vmem:[#allocation14_spill] sm:$0xff] %v2955_v10  ;;  %v2979_v50 = vld [vmem:[%s3325_s2 + $0x80] sm:$0xff]  ;;  %v2985_v51 = vld [vmem:[%s3325_s2 + $0x88] sm:$0xff]  ;;  %v2991_v52 = vld [vmem:[%s3325_s2 + $0x90] sm:$0xff] }
 0x2e0   :  { %v787_v12 = vmul.f32 %v785_v49, %v762_v9  ;;  %v772_v13 = vmul.f32 %v1614_v53, %v771_v6  ;;  %3553 = vst [vmem:[#allocation15_spill] sm:$0xff] %v2961_v47  ;;  %v2973_v49 = vld [vmem:[%s3325_s2 + $0xb8] sm:$0xff]  ;;  %v3003_v5 = vld [vmem:[%s3325_s2 + $0x60] sm:$0xff]  ;;  %v3009_v6 = vld [vmem:[%s3325_s2 + $0x68] sm:$0xff] }
 0x2e1   :  { %3554 = vst [vmem:[#allocation16_spill] sm:$0xff] %v2967_v48  ;;  %v2997_v4 = vld [vmem:[%s3325_s2 + $0x98] sm:$0xff]  ;;  %v3015_v9 = vld [vmem:[%s3325_s2 + $0x70] sm:$0xff] }
 0x2e2   :  { %v2869_v14 = vadd.f32 %v788_v11, %v787_v12  ;;  %v773_v16 = vadd.f32 %v1614_v53, %v772_v13  ;;  %3555 = vst [vmem:[#allocation17_spill] sm:$0xff] %v2973_v49  ;;  %v3021_v11 = vld [vmem:[%s3325_s2 + $0x78] sm:$0xff]  ;;  %v3027_v12 = vld [vmem:[%s3325_s2 + $0x40] sm:$0xff]  ;;  %v3033_v13 = vld [vmem:[%s3325_s2 + $0x48] sm:$0xff] }
 0x2e3   :  { %3556 = vst [vmem:[#allocation18_spill] sm:$0xff] %v2979_v50 }
 0x2e4   :  { %1617 = vtanh.f32 %v2869_v14  ;;  %v777_v18 = vsel %vm776_vm10, %v1614_v53, %v773_v16  ;;  %v2943_v53 = vld [vmem:[%s3325_s2 + $0xd0] sm:$0xff]  ;;  %3557 = vst [vmem:[#allocation19_spill] sm:$0xff] %v2985_v51 }
 0x2e5   :  { %v782_v22 = vsel %vm779_vm11, %v781_v19, %v777_v18  ;;  %3550 = vst [vmem:[#allocation12_spill] sm:$0xff] %v2943_v53  ;;  %v3039_v16 = vld [vmem:[%s3325_s2 + $0x50] sm:$0xff]  ;;  %v3057_v18 = vld [vmem:[%s3325_s2 + $0x28] sm:$0xff] }
 0x2e6   :  { %3558 = vst [vmem:[#allocation20_spill] sm:$0xff] %v2991_v52  ;;  %v3063_v19 = vld [vmem:[%s3325_s2 + $0x30] sm:$0xff] }
 0x2e7   :  { %3559 = vst [vmem:[#allocation21_spill] sm:$0xff] %v2997_v4 }
 0x2e8   :  { %3560 = vst [vmem:[#allocation22_spill] sm:$0xff] %v3003_v5 }
 0x2e9   :  { %3561 = vst [vmem:[#allocation23_spill] sm:$0xff] %v3009_v6 }
 0x2ea   :  { %v1618_v20 = vpop.eup %1617  ;;  %3562 = vst [vmem:[#allocation24_spill] sm:$0xff] %v3015_v9 }
 0x2eb   :  { %v791_v23 = vmul.f32 %v1618_v20, %v782_v22  ;;  %3563 = vst [vmem:[#allocation25_spill] sm:$0xff] %v3021_v11  ;;  %v3069_v20 = vld [vmem:[%s3325_s2 + $0x38] sm:$0xff]  ;;  %v3075_v22 = vld [vmem:[%s3325_s2] sm:$0xff] }
 0x2ec   :  { %3564 = vst [vmem:[#allocation26_spill] sm:$0xff] %v3027_v12 }
 0x2ed   :  { %792 = vst [vmem:[#allocation2] sm:$0xc0] %v791_v23  ;;  %v794_v25 = vrot.slane %v791_v23, 6  ;;  %v3081_v23 = vld [vmem:[%s3325_s2 + $0x8] sm:$0xff] }
 0x2ee   :  { %3565 = vst [vmem:[#allocation27_spill] sm:$0xff] %v3033_v13 }
 0x2ef   :  { %812 = vmatmul.f32.vlgmr.msrb.gmra.mxu0 %v794_v25  ;;  %832 = vmatmul.f32.vlgmr.msrb.gmra.mxu1 %v794_v25  ;;  %3566 = vst [vmem:[#allocation28_spill] sm:$0xff] %v3039_v16 }
 0x2f0   :  { %852 = vmatmul.f32.vlgmr.msrb.gmra.mxu2 %v794_v25  ;;  %872 = vmatmul.f32.vlgmr.msrb.gmra.mxu3 %v794_v25  ;;  %3569 = vst [vmem:[#allocation31_spill] sm:$0xff] %v3057_v18  ;;  %v3087_v25 = vld [vmem:[%s3325_s2 + $0x10] sm:$0xff] }
 0x2f1   :  { %1113 = vmatpush.msrb.mxu0 %v2643_v54  ;;  %1133 = vmatpush.msrb.mxu1 %v2649_v0  ;;  %3570 = vst [vmem:[#allocation32_spill] sm:$0xff] %v3063_v19 }
 0x2f2   :  { %1153 = vmatpush.msrb.mxu2 %v2655_v56  ;;  %1173 = vmatpush.msrb.mxu3 %v2661_v57  ;;  %3571 = vst [vmem:[#allocation33_spill] sm:$0xff] %v3069_v20 }
 0x2f3   :  { %1114 = vmatpush.msrb.mxu0 %v2667_v59  ;;  %1134 = vmatpush.msrb.mxu1 %v2673_v7  ;;  %3572 = vst [vmem:[#allocation5_spill] sm:$0xff] %v3075_v22 }
 0x2f4   :  { %1154 = vmatpush.msrb.mxu2 %v2679_v31  ;;  %1174 = vmatpush.msrb.mxu3 %v2685_v40  ;;  %3573 = vst [vmem:[#allocation4_spill] sm:$0xff] %v3081_v23 }
 0x2f5   :  { %1115 = vmatpush.msrb.mxu0 %v2691_v3  ;;  %1135 = vmatpush.msrb.mxu1 %v2697_v29  ;;  %3574 = vst [vmem:[#allocation34_spill] sm:$0xff] %v3087_v25 }
 0x2f6   :  { %1155 = vmatpush.msrb.mxu2 %v2703_v63  ;;  %1175 = vmatpush.msrb.mxu3 %v2709_v2 }
 0x2f7   :  { %1116 = vmatpush.msrb.mxu0 %v2715_v28  ;;  %1136 = vmatpush.msrb.mxu1 %v2721_v60 }
 0x2f8   :  { %1156 = vmatpush.msrb.mxu2 %v2727_v24  ;;  %1176 = vmatpush.msrb.mxu3 %v2733_v15 }
 0x2f9   :  { %1117 = vmatpush.msrb.mxu0 %v2739_v58  ;;  %1137 = vmatpush.msrb.mxu1 %v2745_v8 }
 0x2fa   :  { %1157 = vmatpush.msrb.mxu2 %v2751_v55  ;;  %1177 = vmatpush.msrb.mxu3 %v2757_v61 }
 0x2fb   :  { %1118 = vmatpush.msrb.mxu0 %v2763_v39  ;;  %1138 = vmatpush.msrb.mxu1 %v2769_v46 }
 0x2fc   :  { %1158 = vmatpush.msrb.mxu2 %v2775_v41  ;;  %1178 = vmatpush.msrb.mxu3 %v3545_v21 }
 0x2fd   :  { %1119 = vmatpush.msrb.mxu0 %v3546_v26  ;;  %1139 = vmatpush.msrb.mxu1 %v3547_v27 }
 0x2fe   :  { %1159 = vmatpush.msrb.mxu2 %v3548_v30  ;;  %1179 = vmatpush.msrb.mxu3 %v3549_v33 }
 0x2ff   :  { %1120 = vmatpush.msrb.mxu0 %v2811_v42  ;;  %1140 = vmatpush.msrb.mxu1 %v2817_v43 }
 0x300   :  { %1160 = vmatpush.msrb.mxu2 %v2823_v45  ;;  %1180 = vmatpush.msrb.mxu3 %v2829_v32 }
 0x301   :  { %1121 = vmatpush.msrb.mxu0 %v2907_v34  ;;  %1141 = vmatpush.msrb.mxu1 %v2913_v35 }
 0x302   :  { %1161 = vmatpush.msrb.mxu2 %v2919_v36  ;;  %1181 = vmatpush.msrb.mxu3 %v2925_v37 }
 0x303   :  { %1122 = vmatpush.msrb.mxu0 %v2931_v38  ;;  %1142 = vmatpush.msrb.mxu1 %v2937_v44 }
 0x304   :  { %1162 = vmatpush.msrb.mxu2 %v2943_v53  ;;  %1182 = vmatpush.msrb.mxu3 %v2949_v62 }
 0x305   :  { %1123 = vmatpush.msrb.mxu0 %v2955_v10  ;;  %1143 = vmatpush.msrb.mxu1 %v2961_v47 }
 0x306   :  { %1163 = vmatpush.msrb.mxu2 %v2967_v48  ;;  %1183 = vmatpush.msrb.mxu3 %v2973_v49 }
 0x307   :  { %1124 = vmatpush.msrb.mxu0 %v2979_v50  ;;  %1144 = vmatpush.msrb.mxu1 %v2985_v51 }
 0x308   :  { %1164 = vmatpush.msrb.mxu2 %v2991_v52  ;;  %1184 = vmatpush.msrb.mxu3 %v2997_v4 }
 0x309   :  { %1125 = vmatpush.msrb.mxu0 %v3003_v5  ;;  %1145 = vmatpush.msrb.mxu1 %v3009_v6 }
 0x30a   :  { %1165 = vmatpush.msrb.mxu2 %v3015_v9  ;;  %1185 = vmatpush.msrb.mxu3 %v3021_v11  ;;  %v3580_v9 = vld [vmem:[#allocation37_spill] sm:$0xff] }
 0x30b   :  { %1126 = vmatpush.msrb.mxu0 %v3027_v12  ;;  %1146 = vmatpush.msrb.mxu1 %v3033_v13  ;;  %v3578_v12 = vld [vmem:[#allocation3_spill] sm:$0xff] }
 0x30c   :  { %1166 = vmatpush.msrb.mxu2 %v3039_v16  ;;  %1186 = vmatpush.msrb.mxu3 %v3045_v1  ;;  %v3577_v1 = vld [vmem:[#allocation7_spill] sm:$0xff]  ;;  %v3579_v11 = vperm.slane %v3578_v12, 3 }
 0x30d   :  { %1127 = vmatpush.msrb.mxu0 %v3051_v17  ;;  %1147 = vmatpush.msrb.mxu1 %v3057_v18  ;;  %v3576_v18 = vld [vmem:[#allocation6_spill] sm:$0xff] }
 0x30e   :  { %1167 = vmatpush.msrb.mxu2 %v3063_v19  ;;  %1187 = vmatpush.msrb.mxu3 %v3069_v20  ;;  %v3093_v20 = vld [vmem:[%s3325_s2 + $0x18] sm:$0xff] }
 0x30f   :  { %1128 = vmatpush.msrb.mxu0 %v3075_v22  ;;  %1148 = vmatpush.msrb.mxu1 %v3081_v23  ;;  %3575 = vst [vmem:[#allocation35_spill] sm:$0xff] %v3093_v20 }
 0x310   :  { %1168 = vmatpush.msrb.mxu2 %v3087_v25  ;;  %1188 = vmatpush.msrb.mxu3 %v3093_v20  ;;  %v3101_v25 = vadd.f32 %v3580_v9, %v3579_v11 }
 0x312   :  { %3581 = vst [vmem:[#allocation36_spill] sm:$0xff] %v3101_v25 }
 0x36c   :  { %v813_v22 = vpop.f32.mrf.mxu0  ;;  %v833_v19 = vpop.f32.mrf.mxu1 }
 0x36d   :  { %v876_v17 = vadd.f32 %v813_v22, %v3576_v18  ;;  %v877_v23 = vadd.f32 %v833_v19, %v3577_v1 }
 0x36f   :  { %v1547_v16 = vmul.f32 -1.442695, %v876_v17  ;;  %v1548_v13 = vmul.f32 -1.442695, %v877_v23  ;;  %v3583_v23 = vld [vmem:[#allocation38_spill] sm:$0xff] }
 0x371   :  { %1619 = vpow2.f32 %v1547_v16  ;;  %v3582_v16 = vperm.slane %v3578_v12, 2 }
 0x372   :  { %1621 = vpow2.f32 %v1548_v13 }
 0x373   :  { %v873_v6 = vpop.f32.mrf.mxu3  ;;  %v853_v17 = vpop.f32.mrf.mxu2  ;;  %v3107_v1 = vadd.f32 %v3583_v23, %v3582_v16 }
 0x374   :  { %v879_v5 = vadd.f32 %v873_v6, %v3101_v25 }
 0x375   :  { %3584 = vst [vmem:[#allocation8_spill] sm:$0xff] %v3107_v1  ;;  %v878_v13 = vadd.f32 %v853_v17, %v3107_v1 }
 0x376   :  { %v1549_v4 = vmul.f32 -1.442695, %v879_v5 }
 0x377   :  { %v1620_v20 = vpop.eup %1619 }
 0x378   :  { %v1622_v52 = vpop.eup %1621  ;;  %v883_v51 = vadd.f32 1.0, %v1620_v20  ;;  %1623 = vpow2.f32 %v1549_v4 }
 0x379   :  { %v902_v22 = vadd.f32 1.0, %v1622_v52 }
 0x37a   :  { %1625 = vrcp.f32 %v883_v51  ;;  %v895_v52 = vand.u32 2147483648, %v883_v51  ;;  %v893_v49 = vand.u32 2147483647, %v883_v51  ;;  %vm889_vm14 = vweird.f32 %v883_v51 }
 0x37b   :  { %1627 = vrcp.f32 %v902_v22  ;;  %v914_v18 = vand.u32 2147483648, %v902_v22  ;;  %v912_v16 = vand.u32 2147483647, %v902_v22  ;;  %vm908_vm15 = vweird.f32 %v902_v22 }
 0x37c   :  { %v896_v17 = vor.u32 1.1754944e-38, %v895_v52  ;;  %vm894_vm2 = vcmp.eq.f32.partialorder %v893_v49, 8.507059e+37 }
 0x37d   :  { %vm913_vm3 = vcmp.eq.f32.partialorder %v912_v16, 8.507059e+37 }
 0x37e   :  { %v1624_v19 = vpop.eup %1623 }
 0x37f   :  { %v922_v9 = vadd.f32 1.0, %v1624_v19 }
 0x380   :  { %v1626_v11 = vpop.eup %1625 }
 0x381   :  { %v1628_v6 = vpop.eup %1627  ;;  %v885_v5 = vmul.f32 %v1626_v11, %v883_v51  ;;  %1629 = vrcp.f32 %v922_v9  ;;  %vm890_vm12 = vweird.f32 %v1626_v11  ;;  %vm928_vm5 = vweird.f32 %v922_v9 }
 0x382   :  { %v904_v25 = vmul.f32 %v1628_v6, %v902_v22  ;;  %1631 = vtanh.f32 %v878_v13  ;;  %vm909_vm13 = vweird.f32 %v1628_v6  ;;  %vm891_vm0 = vmor %vm889_vm14, %vm890_vm12  ;;  %v939_v13 = vrot.slane %v2869_v14, 6 }
 0x383   :  { %v886_v20 = vsub.f32 1.0, %v885_v5  ;;  %vm910_vm1 = vmor %vm908_vm15, %vm909_vm13  ;;  %v915_v5 = vor.u32 1.1754944e-38, %v914_v18  ;;  %v934_v18 = vand.u32 2147483648, %v922_v9  ;;  %v932_v49 = vand.u32 2147483647, %v922_v9 }
 0x384   :  { %v905_v4 = vsub.f32 1.0, %v904_v25 }
 0x385   :  { %v887_v50 = vmul.f32 %v1626_v11, %v886_v20  ;;  %vm933_vm7 = vcmp.eq.f32.partialorder %v932_v49, 8.507059e+37 }
 0x386   :  { %v906_v12 = vmul.f32 %v1628_v6, %v905_v4 }
 0x387   :  { %v1630_v23 = vpop.eup %1629  ;;  %v888_v19 = vadd.f32 %v1626_v11, %v887_v50 }
 0x388   :  { %v907_v1 = vadd.f32 %v1628_v6, %v906_v12  ;;  %v924_v48 = vmul.f32 %v1630_v23, %v922_v9  ;;  %v1632_v20 = vpop.eup %1631  ;;  %vm929_vm4 = vweird.f32 %v1630_v23 }
 0x389   :  { %v892_v25 = vsel %vm891_vm0, %v1626_v11, %v888_v19  ;;  %vm930_vm6 = vmor %vm928_vm5, %vm929_vm4  ;;  %v935_v11 = vor.u32 1.1754944e-38, %v934_v18 }
 0x38a   :  { %v897_v47 = vsel %vm894_vm2, %v896_v17, %v892_v25  ;;  %v911_v10 = vsel %vm910_vm1, %v1628_v6, %v907_v1  ;;  %v925_v4 = vsub.f32 1.0, %v924_v48 }
 0x38b   :  { %v916_v62 = vsel %vm913_vm3, %v915_v5, %v911_v10  ;;  %v942_v53 = vmul.f32 %v1632_v20, %v897_v47 }
 0x38c   :  { %v941_v50 = vmul.f32 %v939_v13, %v916_v62  ;;  %v926_v51 = vmul.f32 %v1630_v23, %v925_v4  ;;  %v3614_v13 = vld [vmem:[#allocation8_spill] sm:$0xff] }
 0x38e   :  { %v3111_v22 = vadd.f32 %v942_v53, %v941_v50  ;;  %v927_v52 = vadd.f32 %v1630_v23, %v926_v51  ;;  %v3613_v53 = vld [vmem:[#allocation36_spill] sm:$0xff] }
 0x390   :  { %1633 = vtanh.f32 %v3111_v22  ;;  %v931_v14 = vsel %vm930_vm6, %v1630_v23, %v927_v52 }
 0x391   :  { %v936_v6 = vsel %vm933_vm7, %v935_v11, %v931_v14 }
 0x396   :  { %v1634_v1 = vpop.eup %1633 }
 0x397   :  { %v945_v48 = vmul.f32 %v1634_v1, %v936_v6 }
 0x399   :  { %946 = vst [vmem:[#allocation2 + $0x8] sm:$0x3] %v945_v48  ;;  %963 = vmatmul.f32.vlgmr.msra.gmra.mxu0 %v945_v48  ;;  %983 = vmatmul.f32.vlgmr.msra.gmra.mxu1 %v945_v48 }
 0x39a   :  { %1003 = vmatmul.f32.vlgmr.msra.gmra.mxu2 %v945_v48  ;;  %1023 = vmatmul.f32.vlgmr.msra.gmra.mxu3 %v945_v48 }
 0x39b   :  { %1279 = vmatpush.msra.mxu0 %v2643_v54  ;;  %1299 = vmatpush.msra.mxu1 %v2649_v0  ;;  %v3585_v54 = vld [vmem:[#allocation12_spill] sm:$0xff]  ;;  %v3586_v0 = vld [vmem:[#allocation13_spill] sm:$0xff] }
 0x39c   :  { %1319 = vmatpush.msra.mxu2 %v2655_v56  ;;  %1339 = vmatpush.msra.mxu3 %v2661_v57  ;;  %v3587_v56 = vld [vmem:[#allocation14_spill] sm:$0xff]  ;;  %v3588_v57 = vld [vmem:[#allocation15_spill] sm:$0xff] }
 0x39d   :  { %1280 = vmatpush.msra.mxu0 %v2667_v59  ;;  %1300 = vmatpush.msra.mxu1 %v2673_v7  ;;  %v3589_v59 = vld [vmem:[#allocation16_spill] sm:$0xff]  ;;  %v3590_v7 = vld [vmem:[#allocation17_spill] sm:$0xff] }
 0x39e   :  { %1320 = vmatpush.msra.mxu2 %v2679_v31  ;;  %1340 = vmatpush.msra.mxu3 %v2685_v40  ;;  %v3591_v31 = vld [vmem:[#allocation18_spill] sm:$0xff]  ;;  %v3592_v40 = vld [vmem:[#allocation19_spill] sm:$0xff] }
 0x39f   :  { %1281 = vmatpush.msra.mxu0 %v2691_v3  ;;  %1301 = vmatpush.msra.mxu1 %v2697_v29  ;;  %v3593_v3 = vld [vmem:[#allocation20_spill] sm:$0xff]  ;;  %v3594_v29 = vld [vmem:[#allocation21_spill] sm:$0xff] }
 0x3a0   :  { %1321 = vmatpush.msra.mxu2 %v2703_v63  ;;  %1341 = vmatpush.msra.mxu3 %v2709_v2  ;;  %v3595_v63 = vld [vmem:[#allocation22_spill] sm:$0xff]  ;;  %v3596_v2 = vld [vmem:[#allocation23_spill] sm:$0xff] }
 0x3a1   :  { %1282 = vmatpush.msra.mxu0 %v2715_v28  ;;  %1302 = vmatpush.msra.mxu1 %v2721_v60  ;;  %v3597_v28 = vld [vmem:[#allocation24_spill] sm:$0xff]  ;;  %v3598_v60 = vld [vmem:[#allocation25_spill] sm:$0xff] }
 0x3a2   :  { %1322 = vmatpush.msra.mxu2 %v2727_v24  ;;  %1342 = vmatpush.msra.mxu3 %v2733_v15  ;;  %v3599_v24 = vld [vmem:[#allocation26_spill] sm:$0xff]  ;;  %v3600_v15 = vld [vmem:[#allocation27_spill] sm:$0xff] }
 0x3a3   :  { %1283 = vmatpush.msra.mxu0 %v2739_v58  ;;  %1303 = vmatpush.msra.mxu1 %v2745_v8  ;;  %v3601_v58 = vld [vmem:[#allocation28_spill] sm:$0xff]  ;;  %v3602_v8 = vld [vmem:[#allocation29_spill] sm:$0xff] }
 0x3a4   :  { %1323 = vmatpush.msra.mxu2 %v2751_v55  ;;  %1343 = vmatpush.msra.mxu3 %v2757_v61  ;;  %v3603_v55 = vld [vmem:[#allocation30_spill] sm:$0xff]  ;;  %v3604_v61 = vld [vmem:[#allocation31_spill] sm:$0xff] }
 0x3a5   :  { %1284 = vmatpush.msra.mxu0 %v2763_v39  ;;  %1304 = vmatpush.msra.mxu1 %v2769_v46  ;;  %v3605_v39 = vld [vmem:[#allocation32_spill] sm:$0xff]  ;;  %v3606_v46 = vld [vmem:[#allocation33_spill] sm:$0xff] }
 0x3a6   :  { %1324 = vmatpush.msra.mxu2 %v2775_v41  ;;  %1344 = vmatpush.msra.mxu3 %v3545_v21  ;;  %v3607_v41 = vld [vmem:[#allocation5_spill] sm:$0xff] }
 0x3a7   :  { %1285 = vmatpush.msra.mxu0 %v3546_v26  ;;  %1305 = vmatpush.msra.mxu1 %v3547_v27 }
 0x3a8   :  { %1325 = vmatpush.msra.mxu2 %v3548_v30  ;;  %1345 = vmatpush.msra.mxu3 %v3549_v33  ;;  %v3611_v30 = vld [vmem:[#allocation6_spill] sm:$0xff] }
 0x3a9   :  { %1286 = vmatpush.msra.mxu0 %v2811_v42  ;;  %1306 = vmatpush.msra.mxu1 %v2817_v43  ;;  %v3609_v42 = vld [vmem:[#allocation34_spill] sm:$0xff]  ;;  %v3610_v43 = vld [vmem:[#allocation35_spill] sm:$0xff] }
 0x3aa   :  { %1326 = vmatpush.msra.mxu2 %v2823_v45  ;;  %1346 = vmatpush.msra.mxu3 %v2829_v32  ;;  %v3608_v32 = vld [vmem:[#allocation4_spill] sm:$0xff] }
 0x3ab   :  { %1287 = vmatpush.msra.mxu0 %v2907_v34  ;;  %1307 = vmatpush.msra.mxu1 %v2913_v35  ;;  %v3612_v34 = vld [vmem:[#allocation7_spill] sm:$0xff] }
 0x3ac   :  { %1327 = vmatpush.msra.mxu2 %v2919_v36  ;;  %1347 = vmatpush.msra.mxu3 %v2925_v37 }
 0x3ad   :  { %1288 = vmatpush.msra.mxu0 %v2931_v38  ;;  %1308 = vmatpush.msra.mxu1 %v2937_v44 }
 0x3ae   :  { %1328 = vmatpush.msra.mxu2 %v3585_v54  ;;  %1348 = vmatpush.msra.mxu3 %v3586_v0 }
 0x3af   :  { %1289 = vmatpush.msra.mxu0 %v3587_v56  ;;  %1309 = vmatpush.msra.mxu1 %v3588_v57 }
 0x3b0   :  { %1329 = vmatpush.msra.mxu2 %v3589_v59  ;;  %1349 = vmatpush.msra.mxu3 %v3590_v7  ;;  %v1102_v7 = vrot.slane %v3111_v22, 6 }
 0x3b1   :  { %1290 = vmatpush.msra.mxu0 %v3591_v31  ;;  %1310 = vmatpush.msra.mxu1 %v3592_v40 }
 0x3b2   :  { %1330 = vmatpush.msra.mxu2 %v3593_v3  ;;  %1350 = vmatpush.msra.mxu3 %v3594_v29 }
 0x3b3   :  { %1291 = vmatpush.msra.mxu0 %v3595_v63  ;;  %1311 = vmatpush.msra.mxu1 %v3596_v2 }
 0x3b4   :  { %1331 = vmatpush.msra.mxu2 %v3597_v28  ;;  %1351 = vmatpush.msra.mxu3 %v3598_v60 }
 0x3b5   :  { %1292 = vmatpush.msra.mxu0 %v3599_v24  ;;  %1312 = vmatpush.msra.mxu1 %v3600_v15 }
 0x3b6   :  { %1332 = vmatpush.msra.mxu2 %v3601_v58  ;;  %1352 = vmatpush.msra.mxu3 %v3602_v8 }
 0x3b7   :  { %1293 = vmatpush.msra.mxu0 %v3603_v55  ;;  %1313 = vmatpush.msra.mxu1 %v3604_v61 }
 0x3b8   :  { %1333 = vmatpush.msra.mxu2 %v3605_v39  ;;  %1353 = vmatpush.msra.mxu3 %v3606_v46 }
 0x3b9   :  { %1294 = vmatpush.msra.mxu0 %v3607_v41  ;;  %1314 = vmatpush.msra.mxu1 %v3608_v32 }
 0x3ba   :  { %1334 = vmatpush.msra.mxu2 %v3609_v42  ;;  %1354 = vmatpush.msra.mxu3 %v3610_v43  ;;  %v1474_v43 = vld [vmem:[%s3326_s4 + $0xf0] sm:$0xff] }
 0x416   :  { %v964_v45 = vpop.f32.mrf.mxu0  ;;  %v984_v21 = vpop.f32.mrf.mxu1 }
 0x417   :  { %v1031_v26 = vrot.slane %v964_v45, 6  ;;  %v1032_v27 = vrot.slane %v984_v21, 6  ;;  %v1475_v45 = vld [vmem:[%s3326_s4 + $0xf8] sm:$0xff]  ;;  %v1472_v21 = vld [vmem:[%s3326_s4 + $0xe0] sm:$0xff] }
 0x419   :  { %v1039_v33 = vadd.f32 %v1031_v26, %v3611_v30  ;;  %v1040_v35 = vadd.f32 %v1032_v27, %v3612_v34  ;;  %v1473_v26 = vld [vmem:[%s3326_s4 + $0xe8] sm:$0xff]  ;;  %v1470_v27 = vld [vmem:[%s3326_s4 + $0xd0] sm:$0xff] }
 0x41b   :  { %v1550_v36 = vmul.f32 -1.442695, %v1039_v33  ;;  %v1551_v37 = vmul.f32 -1.442695, %v1040_v35  ;;  %v1471_v33 = vld [vmem:[%s3326_s4 + $0xd8] sm:$0xff]  ;;  %v1468_v35 = vld [vmem:[%s3326_s4 + $0xc0] sm:$0xff] }
 0x41d   :  { %1635 = vpow2.f32 %v1550_v36  ;;  %v1024_v38 = vpop.f32.mrf.mxu3  ;;  %v1004_v23 = vpop.f32.mrf.mxu2  ;;  %v1469_v36 = vld [vmem:[%s3326_s4 + $0xc8] sm:$0xff] }
 0x41e   :  { %1637 = vpow2.f32 %v1551_v37  ;;  %v1034_v44 = vrot.slane %v1024_v38, 6  ;;  %v1033_v19 = vrot.slane %v1004_v23, 6  ;;  %v1465_v23 = vld [vmem:[%s3326_s4 + $0xa8] sm:$0xff] }
 0x420   :  { %v1042_v62 = vadd.f32 %v1034_v44, %v3613_v53  ;;  %v1041_v20 = vadd.f32 %v1033_v19, %v3614_v13 }
 0x422   :  { %v1552_v10 = vmul.f32 -1.442695, %v1042_v62 }
 0x423   :  { %v1636_v47 = vpop.eup %1635 }
 0x424   :  { %v1638_v9 = vpop.eup %1637  ;;  %v1046_v12 = vadd.f32 1.0, %v1636_v47  ;;  %1639 = vpow2.f32 %v1552_v10  ;;  %v1466_v10 = vld [vmem:[%s3326_s4 + $0xb0] sm:$0xff]  ;;  %v1467_v47 = vld [vmem:[%s3326_s4 + $0xb8] sm:$0xff] }
 0x425   :  { %v1065_v16 = vadd.f32 1.0, %v1638_v9 }
 0x426   :  { %1641 = vrcp.f32 %v1046_v12  ;;  %v1058_v49 = vand.u32 2147483648, %v1046_v12  ;;  %v1056_v1 = vand.u32 2147483647, %v1046_v12  ;;  %vm1052_vm10 = vweird.f32 %v1046_v12 }
 0x427   :  { %1643 = vrcp.f32 %v1065_v16  ;;  %v1077_v14 = vand.u32 2147483648, %v1065_v16  ;;  %v1075_v48 = vand.u32 2147483647, %v1065_v16  ;;  %vm1071_vm11 = vweird.f32 %v1065_v16 }
 0x428   :  { %v1059_v56 = vor.u32 1.1754944e-38, %v1058_v49  ;;  %vm1057_vm14 = vcmp.eq.f32.partialorder %v1056_v1, 8.507059e+37  ;;  %v1456_v49 = vld [vmem:[%s3326_s4 + $0x60] sm:$0xff]  ;;  %v1454_v1 = vld [vmem:[%s3326_s4 + $0x50] sm:$0xff] }
 0x429   :  { %v1078_v31 = vor.u32 1.1754944e-38, %v1077_v14  ;;  %vm1076_vm15 = vcmp.eq.f32.partialorder %v1075_v48, 8.507059e+37  ;;  %v1457_v14 = vld [vmem:[%s3326_s4 + $0x68] sm:$0xff] }
 0x42a   :  { %v1640_v17 = vpop.eup %1639 }
 0x42b   :  { %v1085_v5 = vadd.f32 1.0, %v1640_v17 }
 0x42c   :  { %v1642_v25 = vpop.eup %1641 }
 0x42d   :  { %v1644_v4 = vpop.eup %1643  ;;  %v1048_v50 = vmul.f32 %v1642_v25, %v1046_v12  ;;  %1645 = vrcp.f32 %v1085_v5  ;;  %vm1053_vm8 = vweird.f32 %v1642_v25  ;;  %v1097_v22 = vand.u32 2147483648, %v1085_v5 }
 0x42e   :  { %v1067_v51 = vmul.f32 %v1644_v4, %v1065_v16  ;;  %1647 = vtanh.f32 %v1041_v20  ;;  %vm1072_vm9 = vweird.f32 %v1644_v4  ;;  %vm1054_vm12 = vmor %vm1052_vm10, %vm1053_vm8  ;;  %vm1091_vm1 = vweird.f32 %v1085_v5  ;;  %v1464_v16 = vld [vmem:[%s3326_s4 + $0xa0] sm:$0xff] }
 0x42f   :  { %v1049_v52 = vsub.f32 1.0, %v1048_v50  ;;  %vm1073_vm13 = vmor %vm1071_vm11, %vm1072_vm9  ;;  %v1095_v55 = vand.u32 2147483647, %v1085_v5  ;;  %v1098_v39 = vor.u32 1.1754944e-38, %v1097_v22  ;;  %v1460_v20 = vld [vmem:[%s3326_s4 + $0x80] sm:$0xff] }
 0x430   :  { %v1068_v18 = vsub.f32 1.0, %v1067_v51  ;;  %v1458_v51 = vld [vmem:[%s3326_s4 + $0x70] sm:$0xff] }
 0x431   :  { %v1050_v11 = vmul.f32 %v1642_v25, %v1049_v52  ;;  %vm1096_vm3 = vcmp.eq.f32.partialorder %v1095_v55, 8.507059e+37  ;;  %v1459_v52 = vld [vmem:[%s3326_s4 + $0x78] sm:$0xff]  ;;  %v1444_v55 = vld [vmem:[%s3326_s4] sm:$0xff] }
 0x432   :  { %v1069_v6 = vmul.f32 %v1644_v4, %v1068_v18 }
 0x433   :  { %v1646_v54 = vpop.eup %1645  ;;  %v1051_v0 = vadd.f32 %v1642_v25, %v1050_v11 }
 0x434   :  { %v1070_v57 = vadd.f32 %v1644_v4, %v1069_v6  ;;  %v1087_v59 = vmul.f32 %v1646_v54, %v1085_v5  ;;  %v1648_v3 = vpop.eup %1647  ;;  %vm1092_vm0 = vweird.f32 %v1646_v54  ;;  %v1462_v5 = vld [vmem:[%s3326_s4 + $0x90] sm:$0xff]  ;;  %v1455_v6 = vld [vmem:[%s3326_s4 + $0x58] sm:$0xff] }
 0x435   :  { %v1055_v40 = vsel %vm1054_vm12, %v1642_v25, %v1051_v0  ;;  %vm1093_vm2 = vmor %vm1091_vm1, %vm1092_vm0  ;;  %v1463_v25 = vld [vmem:[%s3326_s4 + $0x98] sm:$0xff]  ;;  %v1452_v0 = vld [vmem:[%s3326_s4 + $0x40] sm:$0xff] }
 0x436   :  { %v1060_v29 = vsel %vm1057_vm14, %v1059_v56, %v1055_v40  ;;  %v1074_v63 = vsel %vm1073_vm13, %v1644_v4, %v1070_v57  ;;  %v1088_v2 = vsub.f32 1.0, %v1087_v59  ;;  %v1461_v4 = vld [vmem:[%s3326_s4 + $0x88] sm:$0xff] }
 0x437   :  { %v1079_v28 = vsel %vm1076_vm15, %v1078_v31, %v1074_v63  ;;  %v1105_v60 = vmul.f32 %v1648_v3, %v1060_v29  ;;  %v1453_v56 = vld [vmem:[%s3326_s4 + $0x48] sm:$0xff]  ;;  %v1450_v3 = vld [vmem:[%s3326_s4 + $0x30] sm:$0xff]  ;;  %v1451_v29 = vld [vmem:[%s3326_s4 + $0x38] sm:$0xff] }
 0x438   :  { %v1104_v24 = vmul.f32 %v1102_v7, %v1079_v28  ;;  %v1089_v15 = vmul.f32 %v1646_v54, %v1088_v2  ;;  %v1448_v63 = vld [vmem:[%s3326_s4 + $0x20] sm:$0xff]  ;;  %v1449_v2 = vld [vmem:[%s3326_s4 + $0x28] sm:$0xff] }
 0x43a   :  { %v3183_v58 = vadd.f32 %v1105_v60, %v1104_v24  ;;  %v1090_v8 = vadd.f32 %v1646_v54, %v1089_v15  ;;  %v1446_v60 = vld [vmem:[%s3326_s4 + $0x10] sm:$0xff]  ;;  %v1447_v24 = vld [vmem:[%s3326_s4 + $0x18] sm:$0xff] }
 0x43c   :  { %1649 = vtanh.f32 %v3183_v58  ;;  %v1094_v61 = vsel %vm1093_vm2, %v1646_v54, %v1090_v8 }
 0x43d   :  { %v1099_v41 = vsel %vm1096_vm3, %v1098_v39, %v1094_v61  ;;  %v1445_v61 = vld [vmem:[%s3326_s4 + $0x8] sm:$0xff] }
 0x442   :  { %v1650_v46 = vpop.eup %1649 }
 0x443   :  { %v1108_v32 = vmul.f32 %v1650_v46, %v1099_v41 }
 0x445   :  { %1109 = vst [vmem:[#allocation2 + $0x8] sm:$0xc] %v1108_v32  ;;  %v1111_v42 = vrot.slane %v1108_v32, 2 }
 0x447   :  { %1129 = vmatmul.f32.vlgmr.msrb.gmra.mxu0 %v1111_v42  ;;  %1149 = vmatmul.f32.vlgmr.msrb.gmra.mxu1 %v1111_v42 }
 0x448   :  { %1169 = vmatmul.f32.vlgmr.msrb.gmra.mxu2 %v1111_v42  ;;  %1189 = vmatmul.f32.vlgmr.msrb.gmra.mxu3 %v1111_v42 }
 0x449   :  { %1482 = vmatpush.msrb.mxu0 %v1474_v43  ;;  %1505 = vmatpush.msrb.mxu1 %v1475_v45 }
 0x44b   :  { %1483 = vmatpush.msrb.mxu0 %v1472_v21  ;;  %1506 = vmatpush.msrb.mxu1 %v1473_v26 }
 0x44d   :  { %1484 = vmatpush.msrb.mxu0 %v1470_v27  ;;  %1507 = vmatpush.msrb.mxu1 %v1471_v33 }
 0x44f   :  { %1485 = vmatpush.msrb.mxu0 %v1468_v35  ;;  %1508 = vmatpush.msrb.mxu1 %v1469_v36 }
 0x451   :  { %1486 = vmatpush.msrb.mxu0 %v1466_v10  ;;  %1509 = vmatpush.msrb.mxu1 %v1467_v47 }
 0x453   :  { %1487 = vmatpush.msrb.mxu0 %v1464_v16  ;;  %1510 = vmatpush.msrb.mxu1 %v1465_v23 }
 0x455   :  { %1488 = vmatpush.msrb.mxu0 %v1462_v5  ;;  %1511 = vmatpush.msrb.mxu1 %v1463_v25 }
 0x457   :  { %1489 = vmatpush.msrb.mxu0 %v1460_v20  ;;  %1512 = vmatpush.msrb.mxu1 %v1461_v4 }
 0x459   :  { %1490 = vmatpush.msrb.mxu0 %v1458_v51  ;;  %1513 = vmatpush.msrb.mxu1 %v1459_v52 }
 0x45b   :  { %1491 = vmatpush.msrb.mxu0 %v1456_v49  ;;  %1514 = vmatpush.msrb.mxu1 %v1457_v14 }
 0x45d   :  { %1492 = vmatpush.msrb.mxu0 %v1454_v1  ;;  %1515 = vmatpush.msrb.mxu1 %v1455_v6  ;;  %v1442_v1 = vld [vmem:[#allocation2] sm:$0xff] }
 0x45f   :  { %1493 = vmatpush.msrb.mxu0 %v1452_v0  ;;  %1516 = vmatpush.msrb.mxu1 %v1453_v56  ;;  %v3293_v56 = vld [vmem:[%s3327_s5] sm:$0x3] }
 0x461   :  { %1494 = vmatpush.msrb.mxu0 %v1450_v3  ;;  %1517 = vmatpush.msrb.mxu1 %v1451_v29  ;;  %v1479_v3 = vperm.slane %v3293_v56, 1 }
 0x463   :  { %1495 = vmatpush.msrb.mxu0 %v1448_v63  ;;  %1518 = vmatpush.msrb.mxu1 %v1449_v2 }
 0x465   :  { %1496 = vmatpush.msrb.mxu0 %v1446_v60  ;;  %1519 = vmatpush.msrb.mxu1 %v1447_v24 }
 0x467   :  { %1497 = vmatpush.msrb.mxu0 %v1444_v55  ;;  %1520 = vmatpush.msrb.mxu1 %v1445_v61 }
 0x4c4   :  { %v1130_v37 = vpop.f32.mrf.mxu0  ;;  %v1150_v38 = vpop.f32.mrf.mxu1 }
 0x4c5   :  { %v1197_v44 = vrot.slane %v1130_v37, 4  ;;  %v1198_v62 = vrot.slane %v1150_v38, 4 }
 0x4c7   :  { %v1205_v9 = vadd.f32 %v1197_v44, %v3611_v30  ;;  %v1206_v12 = vadd.f32 %v1198_v62, %v3612_v34  ;;  %v1268_v62 = vrot.slane %v3183_v58, 6 }
 0x4c9   :  { %v1553_v19 = vmul.f32 -1.442695, %v1205_v9  ;;  %v1554_v17 = vmul.f32 -1.442695, %v1206_v12 }
 0x4cb   :  { %1651 = vpow2.f32 %v1553_v19  ;;  %v1190_v50 = vpop.f32.mrf.mxu3  ;;  %v1170_v31 = vpop.f32.mrf.mxu2 }
 0x4cc   :  { %1653 = vpow2.f32 %v1554_v17  ;;  %v1200_v18 = vrot.slane %v1190_v50, 4  ;;  %v1199_v40 = vrot.slane %v1170_v31, 4 }
 0x4ce   :  { %v1208_v11 = vadd.f32 %v1200_v18, %v3613_v53  ;;  %v1207_v22 = vadd.f32 %v1199_v40, %v3614_v13  ;;  %v1478_v40 = vperm.slane %v3293_v56, 0 }
 0x4d0   :  { %v1555_v48 = vmul.f32 -1.442695, %v1208_v11 }
 0x4d1   :  { %v1652_v54 = vpop.eup %1651 }
 0x4d2   :  { %v1654_v57 = vpop.eup %1653  ;;  %v1212_v59 = vadd.f32 1.0, %v1652_v54  ;;  %1655 = vpow2.f32 %v1555_v48 }
 0x4d3   :  { %v1231_v7 = vadd.f32 1.0, %v1654_v57 }
 0x4d4   :  { %1657 = vrcp.f32 %v1212_v59  ;;  %v1224_v43 = vand.u32 2147483648, %v1212_v59  ;;  %v1222_v26 = vand.u32 2147483647, %v1212_v59  ;;  %vm1218_vm6 = vweird.f32 %v1212_v59 }
 0x4d5   :  { %1659 = vrcp.f32 %v1231_v7  ;;  %v1243_v45 = vand.u32 2147483648, %v1231_v7  ;;  %v1241_v33 = vand.u32 2147483647, %v1231_v7  ;;  %vm1237_vm7 = vweird.f32 %v1231_v7 }
 0x4d6   :  { %v1225_v37 = vor.u32 1.1754944e-38, %v1224_v43  ;;  %vm1223_vm10 = vcmp.eq.f32.partialorder %v1222_v26, 8.507059e+37 }
 0x4d7   :  { %v1244_v10 = vor.u32 1.1754944e-38, %v1243_v45  ;;  %vm1242_vm11 = vcmp.eq.f32.partialorder %v1241_v33, 8.507059e+37 }
 0x4d8   :  { %v1656_v28 = vpop.eup %1655 }
 0x4d9   :  { %v1251_v15 = vadd.f32 1.0, %v1656_v28 }
 0x4da   :  { %v1658_v8 = vpop.eup %1657 }
 0x4db   :  { %v1660_v39 = vpop.eup %1659  ;;  %v1214_v46 = vmul.f32 %v1658_v8, %v1212_v59  ;;  %1661 = vrcp.f32 %v1251_v15  ;;  %vm1219_vm4 = vweird.f32 %v1658_v8  ;;  %v1263_v58 = vand.u32 2147483648, %v1251_v15 }
 0x4dc   :  { %v1233_v41 = vmul.f32 %v1660_v39, %v1231_v7  ;;  %1663 = vtanh.f32 %v1207_v22  ;;  %vm1238_vm5 = vweird.f32 %v1660_v39  ;;  %vm1220_vm8 = vmor %vm1218_vm6, %vm1219_vm4  ;;  %vm1257_vm13 = vweird.f32 %v1251_v15 }
 0x4dd   :  { %v1215_v32 = vsub.f32 1.0, %v1214_v46  ;;  %vm1239_vm9 = vmor %vm1237_vm7, %vm1238_vm5  ;;  %v1261_v50 = vand.u32 2147483647, %v1251_v15  ;;  %v1264_v52 = vor.u32 1.1754944e-38, %v1263_v58 }
 0x4de   :  { %v1234_v42 = vsub.f32 1.0, %v1233_v41 }
 0x4df   :  { %v1216_v21 = vmul.f32 %v1658_v8, %v1215_v32  ;;  %vm1262_vm15 = vcmp.eq.f32.partialorder %v1261_v50, 8.507059e+37 }
 0x4e0   :  { %v1235_v27 = vmul.f32 %v1660_v39, %v1234_v42 }
 0x4e1   :  { %v1662_v35 = vpop.eup %1661  ;;  %v1217_v36 = vadd.f32 %v1658_v8, %v1216_v21 }
 0x4e2   :  { %v1236_v38 = vadd.f32 %v1660_v39, %v1235_v27  ;;  %v1253_v44 = vmul.f32 %v1662_v35, %v1251_v15  ;;  %v1664_v9 = vpop.eup %1663  ;;  %vm1258_vm12 = vweird.f32 %v1662_v35 }
 0x4e3   :  { %v1221_v47 = vsel %vm1220_vm8, %v1658_v8, %v1217_v36  ;;  %vm1259_vm14 = vmor %vm1257_vm13, %vm1258_vm12 }
 0x4e4   :  { %v1226_v12 = vsel %vm1223_vm10, %v1225_v37, %v1221_v47  ;;  %v1240_v16 = vsel %vm1239_vm9, %v1660_v39, %v1236_v38  ;;  %v1254_v23 = vsub.f32 1.0, %v1253_v44 }
 0x4e5   :  { %v1245_v19 = vsel %vm1242_vm11, %v1244_v10, %v1240_v16  ;;  %v1271_v17 = vmul.f32 %v1664_v9, %v1226_v12 }
 0x4e6   :  { %v1270_v5 = vmul.f32 %v1268_v62, %v1245_v19  ;;  %v1255_v25 = vmul.f32 %v1662_v35, %v1254_v23 }
 0x4e8   :  { %v3287_v20 = vadd.f32 %v1271_v17, %v1270_v5  ;;  %v1256_v4 = vadd.f32 %v1662_v35, %v1255_v25 }
 0x4ea   :  { %1665 = vtanh.f32 %v3287_v20  ;;  %v1260_v51 = vsel %vm1259_vm14, %v1662_v35, %v1256_v4  ;;  %v1434_v9 = vrot.slane %v3287_v20, 6 }
 0x4eb   :  { %v1265_v49 = vsel %vm1262_vm15, %v1264_v52, %v1260_v51 }
 0x4f0   :  { %v1666_v18 = vpop.eup %1665 }
 0x4f1   :  { %v1274_v14 = vmul.f32 %v1666_v18, %v1265_v49 }
 0x4f3   :  { %1275 = vst [vmem:[#allocation2 + $0x8] sm:$0x30] %v1274_v14  ;;  %v1277_v11 = vrot.slane %v1274_v14, 4 }
 0x4f5   :  { %1295 = vmatmul.f32.vlgmr.msra.gmra.mxu0 %v1277_v11  ;;  %1315 = vmatmul.f32.vlgmr.msra.gmra.mxu1 %v1277_v11 }
 0x4f6   :  { %1335 = vmatmul.f32.vlgmr.msra.gmra.mxu2 %v1277_v11  ;;  %1355 = vmatmul.f32.vlgmr.msra.gmra.mxu3 %v1277_v11 }
 0x4fd   :  { %1498 = vmatmul.f32.vlgmr.msrb.gmra.mxu0 %v1442_v1  ;;  %1521 = vmatmul.f32.vlgmr.msrb.gmra.mxu1 %v1442_v1 }
 0x572   :  { %v1296_v6 = vpop.f32.mrf.mxu0  ;;  %v1316_v48 = vpop.f32.mrf.mxu1 }
 0x573   :  { %v1363_v54 = vrot.slane %v1296_v6, 2  ;;  %v1364_v0 = vrot.slane %v1316_v48, 2 }
 0x575   :  { %v1371_v57 = vadd.f32 %v1363_v54, %v3611_v30  ;;  %v1372_v59 = vadd.f32 %v1364_v0, %v3612_v34 }
 0x577   :  { %v1556_v7 = vmul.f32 -1.442695, %v1371_v57  ;;  %v1557_v31 = vmul.f32 -1.442695, %v1372_v59 }
 0x579   :  { %1667 = vpow2.f32 %v1556_v7  ;;  %v1356_v29 = vpop.f32.mrf.mxu3  ;;  %v1336_v61 = vpop.f32.mrf.mxu2 }
 0x57a   :  { %1669 = vpow2.f32 %v1557_v31  ;;  %v1366_v63 = vrot.slane %v1356_v29, 2  ;;  %v1499_v2 = vpop.f32.mrf.mxu0  ;;  %v1522_v28 = vpop.f32.mrf.mxu1  ;;  %v1365_v39 = vrot.slane %v1336_v61, 2 }
 0x57b   :  { %v1500_v60 = vadd.f32 %v1499_v2, %v1478_v40  ;;  %v1523_v30 = vadd.f32 %v1522_v28, %v1479_v3 }
 0x57c   :  { %v1374_v34 = vadd.f32 %v1366_v63, %v3613_v53  ;;  %v1373_v32 = vadd.f32 %v1365_v39, %v3614_v13 }
 0x57d   :  { %1528 = vst [vmem:[%s3328_s6] sm:$0xff] %v1500_v60 }
 0x57e   :  { %v1558_v24 = vmul.f32 -1.442695, %v1374_v34  ;;  %1529 = vst [vmem:[%s3328_s6 + $0x8] sm:$0xff] %v1523_v30 }
 0x57f   :  { %v1668_v15 = vpop.eup %1667 }
 0x580   :  { %v1670_v8 = vpop.eup %1669  ;;  %v1378_v22 = vadd.f32 1.0, %v1668_v15  ;;  %1671 = vpow2.f32 %v1558_v24 }
 0x581   :  { %v1397_v55 = vadd.f32 1.0, %v1670_v8 }
 0x582   :  { %1673 = vrcp.f32 %v1378_v22  ;;  %v1390_v27 = vand.u32 2147483648, %v1378_v22  ;;  %v1388_v36 = vand.u32 2147483647, %v1378_v22  ;;  %vm1384_vm2 = vweird.f32 %v1378_v22 }
 0x583   :  { %1675 = vrcp.f32 %v1397_v55  ;;  %v1409_v33 = vand.u32 2147483648, %v1397_v55  ;;  %v1407_v38 = vand.u32 2147483647, %v1397_v55  ;;  %vm1403_vm3 = vweird.f32 %v1397_v55 }
 0x584   :  { %v1391_v13 = vor.u32 1.1754944e-38, %v1390_v27  ;;  %vm1389_vm5 = vcmp.eq.f32.partialorder %v1388_v36, 8.507059e+37 }
 0x585   :  { %v1410_v12 = vor.u32 1.1754944e-38, %v1409_v33  ;;  %vm1408_vm7 = vcmp.eq.f32.partialorder %v1407_v38, 8.507059e+37 }
 0x586   :  { %v1672_v46 = vpop.eup %1671 }
 0x587   :  { %v1417_v53 = vadd.f32 1.0, %v1672_v46 }
 0x588   :  { %v1674_v41 = vpop.eup %1673 }
 0x589   :  { %v1676_v42 = vpop.eup %1675  ;;  %v1380_v43 = vmul.f32 %v1674_v41, %v1378_v22  ;;  %1677 = vrcp.f32 %v1417_v53  ;;  %vm1385_vm0 = vweird.f32 %v1674_v41  ;;  %v1429_v18 = vand.u32 2147483648, %v1417_v53 }
 0x58a   :  { %v1399_v45 = vmul.f32 %v1676_v42, %v1397_v55  ;;  %1679 = vtanh.f32 %v1373_v32  ;;  %vm1404_vm1 = vweird.f32 %v1676_v42  ;;  %vm1386_vm4 = vmor %vm1384_vm2, %vm1385_vm0  ;;  %vm1423_vm9 = vweird.f32 %v1417_v53 }
 0x58b   :  { %v1381_v21 = vsub.f32 1.0, %v1380_v43  ;;  %vm1405_vm6 = vmor %vm1403_vm3, %vm1404_vm1  ;;  %v1427_v20 = vand.u32 2147483647, %v1417_v53  ;;  %v1430_v14 = vor.u32 1.1754944e-38, %v1429_v18 }
 0x58c   :  { %v1400_v26 = vsub.f32 1.0, %v1399_v45 }
 0x58d   :  { %v1382_v35 = vmul.f32 %v1674_v41, %v1381_v21  ;;  %vm1428_vm11 = vcmp.eq.f32.partialorder %v1427_v20, 8.507059e+37 }
 0x58e   :  { %v1401_v37 = vmul.f32 %v1676_v42, %v1400_v26 }
 0x58f   :  { %v1678_v44 = vpop.eup %1677  ;;  %v1383_v62 = vadd.f32 %v1674_v41, %v1382_v35 }
 0x590   :  { %v1402_v10 = vadd.f32 %v1676_v42, %v1401_v37  ;;  %v1419_v47 = vmul.f32 %v1678_v44, %v1417_v53  ;;  %v1680_v23 = vpop.eup %1679  ;;  %vm1424_vm8 = vweird.f32 %v1678_v44 }
 0x591   :  { %v1387_v16 = vsel %vm1386_vm4, %v1674_v41, %v1383_v62  ;;  %vm1425_vm10 = vmor %vm1423_vm9, %vm1424_vm8 }
 0x592   :  { %v1392_v19 = vsel %vm1389_vm5, %v1391_v13, %v1387_v16  ;;  %v1406_v17 = vsel %vm1405_vm6, %v1676_v42, %v1402_v10  ;;  %v1420_v5 = vsub.f32 1.0, %v1419_v47 }
 0x593   :  { %v1411_v25 = vsel %vm1408_vm7, %v1410_v12, %v1406_v17  ;;  %v1437_v4 = vmul.f32 %v1680_v23, %v1392_v19 }
 0x594   :  { %v1436_v58 = vmul.f32 %v1434_v9, %v1411_v25  ;;  %v1421_v50 = vmul.f32 %v1678_v44, %v1420_v5 }
 0x596   :  { %v1438_v51 = vadd.f32 %v1437_v4, %v1436_v58  ;;  %v1422_v52 = vadd.f32 %v1678_v44, %v1421_v50 }
 0x598   :  { %1681 = vtanh.f32 %v1438_v51  ;;  %v1426_v49 = vsel %vm1425_vm10, %v1678_v44, %v1422_v52 }
 0x599   :  { %v1431_v1 = vsel %vm1428_vm11, %v1430_v14, %v1426_v49 }
 0x59e   :  { %v1682_v11 = vpop.eup %1681 }
 0x59f   :  { %v1440_v6 = vmul.f32 %v1682_v11, %v1431_v1 }
 0x5a1   :  { %1441 = vst [vmem:[#allocation2 + $0x8] sm:$0xc0] %v1440_v6 }
 0x5a8   :  { %v1443_v48 = vld [vmem:[#allocation2 + $0x8] sm:$0xff] }
 0x5a9   :  { %1501 = vmatmul.f32.gmra.mxu0 %v1443_v48  ;;  %1524 = vmatmul.f32.gmra.mxu1 %v1443_v48 }
 0x626   :  { %v1502_v54 = vpop.f32.mrf.mxu0  ;;  %v1525_v0 = vpop.f32.mrf.mxu1 }
 0x627   :  { %v1503_v57 = vadd.f32 %v1502_v54, %v1478_v40  ;;  %v1526_v59 = vadd.f32 %v1525_v0, %v1479_v3 }
 0x629   :  { %1530 = vst [vmem:[%s3328_s6 + $0x10] sm:$0xff] %v1503_v57 }
 0x62a   :  { %1531 = vst [vmem:[%s3328_s6 + $0x18] sm:$0xff] %v1526_v59 }

</bundles_post_ra>
